<compile_context>
chip_gen: v7x
topology: tpu7x:2x2x1
jax: 0.10.0
libtpu: 0.0.40
codegen_flags: <defaults>
</compile_context>

<pallas_src>
import jax
import jax.numpy as jnp
from jax import lax
from jax.experimental import pallas as pl
from jax.experimental.pallas import tpu as pltpu

EPS = 1e-5


def bn_relu_kernel(x_ref, gamma_ref, beta_ref, o_ref):
    # x_ref:     (R, Cb) channels-last; R = N*H*W (full reduction extent resident)
    # gamma_ref: (1, Cb)
    # beta_ref:  (1, Cb)
    x = x_ref[...]
    inv_r = 1.0 / x.shape[0]

    # Single streaming pass: per-channel sum and sum-of-squares (lane-wise).
    s = jnp.sum(x, axis=0, keepdims=True)          # (1, Cb)
    ss = jnp.sum(x * x, axis=0, keepdims=True)     # (1, Cb)
    mean = s * inv_r
    # Biased variance; clamp against catastrophic cancellation of E[x^2]-mean^2.
    var = jnp.maximum(ss * inv_r - mean * mean, 0.0)
    inv_std = lax.rsqrt(var + EPS)

    scale = inv_std * gamma_ref[...]               # (1, Cb)
    shift = beta_ref[...] - mean * scale           # (1, Cb)

    # Fused multiply-add + ReLU, dense unmasked store (Cb multiple of 128).
    o_ref[...] = jnp.maximum(x * scale + shift, 0.0).astype(o_ref.dtype)


def _default_c_block(C):
    """One grid step on single-TC chips; 2-way parallel split on dual-TC v7x."""
    try:
        kind = jax.devices()[0].device_kind.lower()
    except Exception:
        kind = ""
    if "v7" in kind and C % 256 == 0:
        return C // 2
    return C


def batchnorm_relu_nhwc_flat(x_flat, gamma, beta, *, c_block=None):
    """x_flat: (R, C) = (N*H*W, C) float32, channels on the lane axis."""
    R, C = x_flat.shape
    if c_block is None:
        c_block = _default_c_block(C)
    c_block = min(c_block, C)
    assert C % c_block == 0, "channel count must be a multiple of the channel tile"
    assert c_block % 128 == 0, "channel tile must be lane-dense (multiple of 128)"

    gamma2 = gamma.reshape(1, C)
    beta2 = beta.reshape(1, C)

    itemsize = jnp.dtype(x_flat.dtype).itemsize
    cost = pl.CostEstimate(
        flops=6 * R * C,
        transcendentals=C,
        bytes_accessed=2 * R * C * itemsize + 2 * C * itemsize,
    )

    return pl.pallas_call(
        bn_relu_kernel,
        out_shape=jax.ShapeDtypeStruct((R, C), x_flat.dtype),
        grid_spec=pltpu.PrefetchScalarGridSpec(
            num_scalar_prefetch=0,
            grid=(C // c_block,),
            in_specs=[
                pl.BlockSpec((R, c_block), lambda j: (0, j)),
                pl.BlockSpec((1, c_block), lambda j: (0, j)),
                pl.BlockSpec((1, c_block), lambda j: (0, j)),
            ],
            out_specs=pl.BlockSpec((R, c_block), lambda j: (0, j)),
        ),
        compiler_params=pltpu.CompilerParams(
            dimension_semantics=("parallel",)),
        cost_estimate=cost,
    )(x_flat, gamma2, beta2)


def batchnorm_relu(x_nchw, gamma, beta, *, c_block=None):
    """x_nchw: (N, C, H, W) float32; gamma/beta: (C,) float32."""
    N, C, H, W = x_nchw.shape
    # NCHW -> (N*H*W, C) channels-last view for lane-dense kernel access.
    # TODO(synk): accept NHWC straight from the producer to drop these transposes.
    x_flat = jnp.transpose(x_nchw, (0, 2, 3, 1)).reshape(N * H * W, C)
    out_flat = batchnorm_relu_nhwc_flat(x_flat, gamma, beta, c_block=c_block)
    return jnp.transpose(out_flat.reshape(N, H, W, C), (0, 3, 1, 2))


def _reference(x_nchw, gamma, beta):
    mean = jnp.mean(x_nchw, axis=(0, 2, 3), keepdims=True)
    var = jnp.mean((x_nchw - mean) ** 2, axis=(0, 2, 3), keepdims=True)
    y = (x_nchw - mean) * lax.rsqrt(var + EPS)
    y = y * gamma.reshape(1, -1, 1, 1) + beta.reshape(1, -1, 1, 1)
    return jnp.maximum(y, 0.0)


if __name__ == "__main__":
    key = jax.random.PRNGKey(0)
    kx, kg, kb = jax.random.split(key, 3)

    # Shape implied by the module's forward: x333 = randn([1, 2048, 7, 7]).
    N, C, H, W = 1, 2048, 7, 7
    x = jax.random.normal(kx, (N, C, H, W), dtype=jnp.float32)
    # PyTorch default affine params are ones/zeros; use non-trivial values to
    # exercise the affine path.
    gamma = 1.0 + 0.1 * jax.random.normal(kg, (C,), dtype=jnp.float32)
    beta = 0.1 * jax.random.normal(kb, (C,), dtype=jnp.float32)

    out = batchnorm_relu(x, gamma, beta)
    out = jax.block_until_ready(out)

    ref = _reference(x, gamma, beta)
    assert out.shape == (N, C, H, W)
    assert jnp.max(jnp.abs(out - ref)) < 1e-4

    print("KERNEL_OK")
</pallas_src>

<mosaic_0001>
module attributes {stable_mosaic.version = 11 : i64} {
  func.func @bn_relu_kernel(%arg0: i32, %arg1: memref<49x2048xf32, #tpu.memory_space<vmem>>, %arg2: memref<1x2048xf32, #tpu.memory_space<vmem>>, %arg3: memref<1x2048xf32, #tpu.memory_space<vmem>>, %arg4: memref<49x2048xf32, #tpu.memory_space<vmem>>) attributes {dimension_semantics = [#tpu.dimension_semantics<parallel>], iteration_bounds = array<i64: 1>, scalar_prefetch = 0 : i64, scratch_operands = 0 : i64, tpu.core_type = #tpu.core_type<tc>, window_params = [{transform_indices = @transform_0, window_bounds = array<i64: 49, 2048>}, {transform_indices = @transform_1, window_bounds = array<i64: 1, 2048>}, {transform_indices = @transform_2, window_bounds = array<i64: 1, 2048>}, {transform_indices = @transform_3, window_bounds = array<i64: 49, 2048>}]} {
    %c0 = arith.constant 0 : index
    %c0_0 = arith.constant 0 : index
    %0 = vector.load %arg1[%c0, %c0_0] : memref<49x2048xf32, #tpu.memory_space<vmem>>, vector<49x2048xf32>
    %cst = arith.constant dense<0.000000e+00> : vector<2048xf32>
    %1 = vector.multi_reduction <add>, %0, %cst [0] : vector<49x2048xf32> to vector<2048xf32>
    %2 = vector.shape_cast %1 : vector<2048xf32> to vector<1x2048xf32>
    %3 = arith.mulf %0, %0 : vector<49x2048xf32>
    %cst_1 = arith.constant dense<0.000000e+00> : vector<2048xf32>
    %4 = vector.multi_reduction <add>, %3, %cst_1 [0] : vector<49x2048xf32> to vector<2048xf32>
    %5 = vector.shape_cast %4 : vector<2048xf32> to vector<1x2048xf32>
    %cst_2 = arith.constant 0.0204081628 : f32
    %6 = vector.broadcast %cst_2 : f32 to vector<1x2048xf32>
    %7 = arith.mulf %2, %6 : vector<1x2048xf32>
    %cst_3 = arith.constant 0.0204081628 : f32
    %8 = vector.broadcast %cst_3 : f32 to vector<1x2048xf32>
    %9 = arith.mulf %5, %8 : vector<1x2048xf32>
    %10 = arith.mulf %7, %7 : vector<1x2048xf32>
    %11 = arith.subf %9, %10 : vector<1x2048xf32>
    %cst_4 = arith.constant 0.000000e+00 : f32
    %12 = vector.broadcast %cst_4 : f32 to vector<1x2048xf32>
    %13 = arith.maximumf %11, %12 : vector<1x2048xf32>
    %cst_5 = arith.constant 9.99999974E-6 : f32
    %14 = vector.broadcast %cst_5 : f32 to vector<1x2048xf32>
    %15 = arith.addf %13, %14 : vector<1x2048xf32>
    %16 = math.rsqrt %15 : vector<1x2048xf32>
    %c0_6 = arith.constant 0 : index
    %c0_7 = arith.constant 0 : index
    %17 = vector.load %arg2[%c0_6, %c0_7] : memref<1x2048xf32, #tpu.memory_space<vmem>>, vector<1x2048xf32>
    %18 = arith.mulf %16, %17 : vector<1x2048xf32>
    %c0_8 = arith.constant 0 : index
    %c0_9 = arith.constant 0 : index
    %19 = vector.load %arg3[%c0_8, %c0_9] : memref<1x2048xf32, #tpu.memory_space<vmem>>, vector<1x2048xf32>
    %20 = arith.mulf %7, %18 : vector<1x2048xf32>
    %21 = arith.subf %19, %20 : vector<1x2048xf32>
    %22 = vector.broadcast %18 : vector<1x2048xf32> to vector<49x2048xf32>
    %23 = arith.mulf %0, %22 : vector<49x2048xf32>
    %24 = vector.broadcast %21 : vector<1x2048xf32> to vector<49x2048xf32>
    %25 = arith.addf %23, %24 : vector<49x2048xf32>
    %cst_10 = arith.constant 0.000000e+00 : f32
    %26 = vector.broadcast %cst_10 : f32 to vector<49x2048xf32>
    %27 = arith.maximumf %25, %26 : vector<49x2048xf32>
    %c0_11 = arith.constant 0 : index
    %c0_12 = arith.constant 0 : index
    %28 = vector.load %arg4[%c0_11, %c0_12] : memref<49x2048xf32, #tpu.memory_space<vmem>>, vector<49x2048xf32>
    tpu.vector_store %arg4[%c0_11, %c0_12], %27 {strides = array<i32>} : memref<49x2048xf32, #tpu.memory_space<vmem>>, vector<49x2048xf32>,
    return
  }
  func.func @transform_0(%arg0: i32) -> (i32, i32) {
    %c0_i32 = arith.constant 0 : i32
    %c0_i32_0 = arith.constant 0 : i32
    return %c0_i32, %arg0 : i32, i32
  }
  func.func @transform_1(%arg0: i32) -> (i32, i32) {
    %c0_i32 = arith.constant 0 : i32
    %c0_i32_0 = arith.constant 0 : i32
    return %c0_i32, %arg0 : i32, i32
  }
  func.func @transform_2(%arg0: i32) -> (i32, i32) {
    %c0_i32 = arith.constant 0 : i32
    %c0_i32_0 = arith.constant 0 : i32
    return %c0_i32, %arg0 : i32, i32
  }
  func.func @transform_3(%arg0: i32) -> (i32, i32) {
    %c0_i32 = arith.constant 0 : i32
    %c0_i32_0 = arith.constant 0 : i32
    return %c0_i32, %arg0 : i32, i32
  }
}

</mosaic_0001>

<bundles_post_ra>
// kernel: tpu_custom_call.1
= control target key start
LH: loop header
LB: loop body
LE: loop exit
PB: predicated region body
PF: predicated region fallthrough
CT: control target
= control target key end

     0   :  { %8 = vsyncpa [#allocation3], 0  ;;  %s3395_s0 = inlined_call_operand.hbm [shape: f32[49,2048], index: 0, kind: input, shape index: {}]   ;;  %s3396_s1 = inlined_call_operand.hbm [shape: f32[1,2048], index: 1, kind: input, shape index: {}]   ;;  %s3397_s2 = inlined_call_operand.hbm [shape: f32[1,2048], index: 2, kind: input, shape index: {}]   ;;  %s3398_s3 = inlined_call_operand.hbm [shape: f32[49,2048], index: 3, kind: output, shape index: {}]  }
   0x1   :  { %9 = vsyncpa [#allocation6], 0 }
   0x2   :  { %10 = vsyncpa [#allocation4], 0  ;;  %s1886_s12 = smov [#allocation5]   ;;  %s1887_s14 = smov [#allocation2]  }
   0x3   :  { %s29_s13 = sshll.u32 %s1886_s12, 4  ;;  %s16_s15 = sshll.u32 %s1887_s14, 4  ;;  %s30_s13 = int_to_ptr.vmem [resolvable:$true] %s29_s13  ;;  %s1913_s15 = int_to_ptr.vmem [resolvable:$true] %s16_s15 }
   0x4   :  { %s1792_s18 = scalar_lea.hbm %s3396_s1, 256 }
   0x5   :  { %p1793_p0 = scmp.ne.s32.totalorder %s3396_s1, %s1792_s18  ;;  %p1796_p1 = scmp.lt.u32.totalorder %s1792_s18, %s3396_s1 }
   0x7   :  { %p1798_p2 = pnand %p1796_p1, %p1793_p0 }
   0x9   :  { %1801 = shalt.err (!%p1798_p2)
}
   0xa   :  { %s1802_s23 = scalar_lea.vmem %s30_s13, 256  ;;  %p1807_p4 = scmp.lt.s32.totalorder %s30_s13, %s30_s13 }
   0xb   :  { %p1803_p3 = scmp.ne.s32.totalorder %s30_s13, %s1802_s23  ;;  %p1808_p5 = scmp.lt.s32.totalorder %s1802_s23, %s1802_s23 }
   0xd   :  { %p1809_p6 = por %p1808_p5, %p1807_p4 }
   0xf   :  { %p1810_p7 = pnand %p1809_p6, %p1803_p3 }
  0x11   :  { %1813 = shalt.err (!%p1810_p7)
}
  0x12   :  { %32 = dma.hbm_to_vmem [thread:$0]  %s3396_s1, 256, %s30_s13, [#allocation6]  }
  0x13   :  { %s1814_s28 = scalar_lea.hbm %s3395_s0, 14336 }
  0x14   :  { %p1815_p8 = scmp.ne.s32.totalorder %s3395_s0, %s1814_s28  ;;  %p1818_p9 = scmp.lt.u32.totalorder %s1814_s28, %s3395_s0 }
  0x16   :  { %p1820_p10 = pnand %p1818_p9, %p1815_p8 }
  0x18   :  { %1823 = shalt.err (!%p1820_p10)
}
  0x19   :  { %s1824_s6 = scalar_lea.vmem %s1913_s15, 14336  ;;  %p1829_p12 = scmp.lt.s32.totalorder %s1913_s15, %s1913_s15 }
  0x1a   :  { %p1825_p11 = scmp.ne.s32.totalorder %s1913_s15, %s1824_s6  ;;  %p1830_p13 = scmp.lt.s32.totalorder %s1824_s6, %s1824_s6 }
  0x1c   :  { %p1831_p0 = por %p1830_p13, %p1829_p12 }
  0x1e   :  { %p1832_p1 = pnand %p1831_p0, %p1825_p11 }
  0x20   :  { %1835 = shalt.err (!%p1832_p1)
}
  0x21   :  { %s1888_s1 = smov 2048   ;;  %s1889_s7 = smov 128  }
  0x22   :  { %22 = dma.hbm_to_vmem [thread:$0]  %s3395_s0, 14336, %s1913_s15, [#allocation3], %s1888_s1, %s1888_s1, %s1889_s7  }
  0x23   :  { %s1890_s10 = smov [#allocation7]   ;;  %s1836_s14 = scalar_lea.hbm %s3397_s2, 256 }
  0x24   :  { %s39_s11 = sshll.u32 %s1890_s10, 4  ;;  %p1837_p2 = scmp.ne.s32.totalorder %s3397_s2, %s1836_s14  ;;  %s40_s11 = int_to_ptr.vmem [resolvable:$true] %s39_s11 }
  0x25   :  { %p1840_p3 = scmp.lt.u32.totalorder %s1836_s14, %s3397_s2 }
  0x27   :  { %p1842_p4 = pnand %p1840_p3, %p1837_p2 }
  0x29   :  { %1845 = shalt.err (!%p1842_p4)
}
  0x2a   :  { %s1846_s20 = scalar_lea.vmem %s40_s11, 256  ;;  %p1851_p6 = scmp.lt.s32.totalorder %s40_s11, %s40_s11 }
  0x2b   :  { %p1847_p5 = scmp.ne.s32.totalorder %s40_s11, %s1846_s20  ;;  %p1852_p7 = scmp.lt.s32.totalorder %s1846_s20, %s1846_s20 }
  0x2d   :  { %p1853_p8 = por %p1852_p7, %p1851_p6 }
  0x2f   :  { %p1854_p9 = pnand %p1853_p8, %p1847_p5 }
  0x31   :  { %1857 = shalt.err (!%p1854_p9)
}
  0x32   :  { %42 = dma.hbm_to_vmem [thread:$0]  %s3397_s2, 256, %s40_s11, [#allocation6]  }
  0x33   :  { %1880 = dma.done.wait [#allocation3], 14336  }
  0x34   :  { %1881 = vsyncadd [#allocation3], 4294952960 }
  0x35   :  { %1882 = dma.done.wait [#allocation6], 512  }
  0x36   :  { %1883 = vsyncadd [#allocation6], 4294966784  ;;  %v809_v0 = vlaneseq  ;;  %v1891_v1 = vmov 1966171168   ;;  %v1967_v9 = vld [vmem:[#allocation2] sm:$0xff]  ;;  %v1969_v10 = vld [vmem:[#allocation2 + $0x8] sm:$0xff] }
  0x37   :  { %v944_v2 = vunpack.c.l.s4 %v1891_v1  ;;  %3503 = vst [vmem:[#allocation16_spill] sm:$0xff] %v1967_v9  ;;  %3504 = vst [vmem:[#allocation17_spill] sm:$0xff] %v1969_v10  ;;  %v1971_v11 = vld [vmem:[#allocation2 + $0x10] sm:$0xff]  ;;  %v1979_v15 = vld [vmem:[#allocation2 + $0x18] sm:$0xff]  ;;  %v1987_v18 = vmul.f32 %v1967_v9, %v1967_v9  ;;  %v1991_v19 = vmul.f32 %v1969_v10, %v1969_v10  ;;  %vm169_vm0 = vcmask 1040384   ;;  %s1892_s2 = smov [#allocation8]  }
  0x38   :  { %v810_v3 = vshrl.u32 %v809_v0, 7  ;;  %3505 = vst [vmem:[#allocation18_spill] sm:$0xff] %v1971_v11  ;;  %3509 = vst [vmem:[#allocation22_spill] sm:$0xff] %v1979_v15  ;;  %v1981_v16 = vld [vmem:[#allocation2 + $0x20] sm:$0xff]  ;;  %v1983_v17 = vld [vmem:[#allocation2 + $0x28] sm:$0xff]  ;;  %v2003_v25 = vmul.f32 %v1971_v11, %v1971_v11  ;;  %v2007_v26 = vmul.f32 %v1979_v15, %v1979_v15  ;;  %s1640_s21 = sshll.u32 %s1892_s2, 4  ;;  %s1641_s21 = int_to_ptr.vmem [resolvable:$true] %s1640_s21 }
  0x39   :  { %v945_v4 = vunpack.c.0.s8 %v944_v2  ;;  %3510 = vst [vmem:[#allocation23_spill] sm:$0xff] %v1981_v16  ;;  %3511 = vst [vmem:[#allocation24_spill] sm:$0xff] %v1983_v17  ;;  %v1997_v22 = vld [vmem:[#allocation2 + $0x30] sm:$0xff]  ;;  %v1999_v23 = vld [vmem:[#allocation2 + $0x38] sm:$0xff]  ;;  %v2011_v27 = vmul.f32 %v1981_v16, %v1981_v16  ;;  %v2015_v28 = vmul.f32 %v1983_v17, %v1983_v17  ;;  %s1858_s22 = scalar_lea.vmem %s1641_s21, 14336  ;;  %p1863_p11 = scmp.lt.s32.totalorder %s1641_s21, %s1641_s21 }
  0x3a   :  { %v1959_v5 = vsub.s32 0, %v810_v3  ;;  %v1961_v6 = vsub.s32 1, %v810_v3  ;;  %v1963_v7 = vsub.s32 2, %v810_v3  ;;  %v1965_v8 = vsub.s32 3, %v810_v3  ;;  %3512 = vst [vmem:[#allocation25_spill] sm:$0xff] %v1991_v19  ;;  %3515 = vst [vmem:[#allocation28_spill] sm:$0xff] %v1997_v22  ;;  %p1859_p10 = scmp.ne.s32.totalorder %s1641_s21, %s1858_s22  ;;  %p1864_p12 = scmp.lt.s32.totalorder %s1858_s22, %s1858_s22 }
  0x3b   :  { %v1973_v12 = vsub.s32 4, %v810_v3  ;;  %v1975_v13 = vsub.s32 5, %v810_v3  ;;  %v1977_v14 = vsub.s32 6, %v810_v3  ;;  %v1993_v20 = vsub.s32 7, %v810_v3  ;;  %3516 = vst [vmem:[#allocation29_spill] sm:$0xff] %v1999_v23  ;;  %v68_v24 = vld [vmem:[#allocation2 + $0x80] sm:$0xff] }
  0x3c   :  { %3499 = vst [vmem:[#allocation12_spill] sm:$0xff] %v1959_v5  ;;  %3500 = vst [vmem:[#allocation13_spill] sm:$0xff] %v1961_v6  ;;  %v1995_v21 = vsub.s32 %v945_v4, %v810_v3  ;;  %v69_v29 = vld [vmem:[#allocation2 + $0x88] sm:$0xff]  ;;  %v70_v30 = vld [vmem:[#allocation2 + $0x90] sm:$0xff]  ;;  %v164_v32 = vadd.f32 %v68_v24, %v1967_v9  ;;  %v2020_v33 = vmul.f32 %v1997_v22, %v1997_v22  ;;  %p1865_p13 = por %p1864_p12, %p1863_p11 }
  0x3d   :  { %3501 = vst [vmem:[#allocation14_spill] sm:$0xff] %v1963_v7  ;;  %3502 = vst [vmem:[#allocation15_spill] sm:$0xff] %v1965_v8  ;;  %v71_v31 = vld [vmem:[#allocation2 + $0x98] sm:$0xff]  ;;  %v2024_v34 = vmul.f32 %v1999_v23, %v1999_v23  ;;  %v2026_v35 = vmul.f32 %v68_v24, %v68_v24  ;;  %v72_v36 = vld [vmem:[#allocation2 + $0xa0] sm:$0xff]  ;;  %v178_v39 = vadd.f32 %v69_v29, %v1969_v10 }
  0x3e   :  { %3506 = vst [vmem:[#allocation19_spill] sm:$0xff] %v1973_v12  ;;  %3507 = vst [vmem:[#allocation20_spill] sm:$0xff] %v1975_v13  ;;  %v73_v37 = vld [vmem:[#allocation2 + $0xa8] sm:$0xff]  ;;  %v74_v38 = vld [vmem:[#allocation2 + $0xb0] sm:$0xff]  ;;  %v191_v40 = vadd.f32 %v70_v30, %v1971_v11  ;;  %v204_v41 = vadd.f32 %v71_v31, %v1979_v15  ;;  %v2031_v42 = vmul.f32 %v69_v29, %v69_v29  ;;  %p1866_p0 = pnand %p1865_p13, %p1859_p10 }
  0x3f   :  { %3508 = vst [vmem:[#allocation21_spill] sm:$0xff] %v1977_v14  ;;  %3513 = vst [vmem:[#allocation26_spill] sm:$0xff] %v1993_v20  ;;  %v75_v43 = vld [vmem:[#allocation2 + $0xb8] sm:$0xff]  ;;  %v84_v44 = vld [vmem:[#allocation2 + $0x100] sm:$0xff]  ;;  %v217_v46 = vadd.f32 %v72_v36, %v1981_v16  ;;  %v230_v47 = vadd.f32 %v73_v37, %v1983_v17  ;;  %v243_v48 = vadd.f32 %v74_v38, %v1997_v22 }
  0x40   :  { %3514 = vst [vmem:[#allocation27_spill] sm:$0xff] %v1995_v21  ;;  %3517 = vst [vmem:[#allocation30_spill] sm:$0xff] %v2003_v25  ;;  %v85_v45 = vld [vmem:[#allocation2 + $0x108] sm:$0xff]  ;;  %v2036_v49 = vmul.f32 %v70_v30, %v70_v30  ;;  %v86_v50 = vld [vmem:[#allocation2 + $0x110] sm:$0xff]  ;;  %v165_v53 = vadd.f32 %v164_v32, %v84_v44  ;;  %v256_v55 = vadd.f32 %v75_v43, %v1999_v23 }
  0x41   :  { %3518 = vst [vmem:[#allocation31_spill] sm:$0xff] %v2007_v26  ;;  %3519 = vst [vmem:[#allocation32_spill] sm:$0xff] %v2011_v27  ;;  %v87_v51 = vld [vmem:[#allocation2 + $0x118] sm:$0xff]  ;;  %v2038_v52 = vld [vmem:[#allocation2 + $0x120] sm:$0xff]  ;;  %v179_v54 = vadd.f32 %v178_v39, %v85_v45  ;;  %v2041_v56 = vmul.f32 %v71_v31, %v71_v31  ;;  %v192_v60 = vadd.f32 %v191_v40, %v86_v50 }
  0x42   :  { %3520 = vst [vmem:[#allocation33_spill] sm:$0xff] %v2015_v28  ;;  %3521 = vst [vmem:[#allocation34_spill] sm:$0xff] %v2020_v33  ;;  %v2043_v57 = vld [vmem:[#allocation2 + $0x128] sm:$0xff]  ;;  %v2045_v58 = vld [vmem:[#allocation2 + $0x130] sm:$0xff]  ;;  %v205_v61 = vadd.f32 %v204_v41, %v87_v51  ;;  %v218_v62 = vadd.f32 %v217_v46, %v2038_v52  ;;  %v2050_v63 = vmul.f32 %v72_v36, %v72_v36 }
  0x43   :  { %3522 = vst [vmem:[#allocation35_spill] sm:$0xff] %v2024_v34  ;;  %3523 = vst [vmem:[#allocation36_spill] sm:$0xff] %v2031_v42  ;;  %v2047_v59 = vld [vmem:[#allocation2 + $0x138] sm:$0xff]  ;;  %v2052_v0 = vld [vmem:[#allocation2 + $0x180] sm:$0xff]  ;;  %v231_v3 = vadd.f32 %v230_v47, %v2043_v57  ;;  %v244_v4 = vadd.f32 %v243_v48, %v2045_v58  ;;  %v2061_v29 = vmul.f32 %v73_v37, %v73_v37 }
  0x44   :  { %3524 = vst [vmem:[#allocation37_spill] sm:$0xff] %v2036_v49  ;;  %3525 = vst [vmem:[#allocation38_spill] sm:$0xff] %v2041_v56  ;;  %v2054_v1 = vld [vmem:[#allocation2 + $0x188] sm:$0xff]  ;;  %v2056_v2 = vld [vmem:[#allocation2 + $0x190] sm:$0xff]  ;;  %v257_v24 = vadd.f32 %v256_v55, %v2047_v59  ;;  %v166_v36 = vadd.f32 %v165_v53, %v2052_v0  ;;  %v2072_v41 = vmul.f32 %v74_v38, %v74_v38 }
  0x45   :  { %3526 = vst [vmem:[#allocation39_spill] sm:$0xff] %v2050_v63  ;;  %3527 = vst [vmem:[#allocation40_spill] sm:$0xff] %v2061_v29  ;;  %v2063_v30 = vld [vmem:[#allocation2 + $0x198] sm:$0xff]  ;;  %v2065_v31 = vld [vmem:[#allocation2 + $0x1a0] sm:$0xff]  ;;  %v180_v39 = vadd.f32 %v179_v54, %v2054_v1  ;;  %v193_v40 = vadd.f32 %v192_v60, %v2056_v2  ;;  %v2083_v22 = vmul.f32 %v75_v43, %v75_v43 }
  0x46   :  { %v2067_v32 = vld [vmem:[#allocation2 + $0x1a8] sm:$0xff]  ;;  %3528 = vst [vmem:[#allocation41_spill] sm:$0xff] %v2072_v41  ;;  %v2074_v46 = vld [vmem:[#allocation2 + $0x1b0] sm:$0xff]  ;;  %v2076_v47 = vld [vmem:[#allocation2 + $0x1b8] sm:$0xff]  ;;  %v206_v48 = vadd.f32 %v205_v61, %v2063_v30  ;;  %v219_v55 = vadd.f32 %v218_v62, %v2065_v31  ;;  %v2094_v15 = vmul.f32 %v84_v44, %v84_v44  ;;  %v2105_v10 = vmul.f32 %v85_v45, %v85_v45 }
  0x47   :  { %v2078_v37 = vld [vmem:[#allocation2 + $0x200] sm:$0xff]  ;;  %v232_v23 = vadd.f32 %v231_v3, %v2067_v32  ;;  %3529 = vst [vmem:[#allocation42_spill] sm:$0xff] %v2083_v22  ;;  %v2085_v53 = vld [vmem:[#allocation2 + $0x208] sm:$0xff]  ;;  %v2087_v54 = vld [vmem:[#allocation2 + $0x210] sm:$0xff]  ;;  %v245_v17 = vadd.f32 %v244_v4, %v2074_v46  ;;  %v258_v16 = vadd.f32 %v257_v24, %v2076_v47  ;;  %v2116_v14 = vmul.f32 %v86_v50, %v86_v50 }
  0x48   :  { %v2089_v38 = vld [vmem:[#allocation2 + $0x218] sm:$0xff]  ;;  %v167_v60 = vadd.f32 %v166_v36, %v2078_v37  ;;  %3530 = vst [vmem:[#allocation43_spill] sm:$0xff] %v2094_v15  ;;  %v2096_v61 = vld [vmem:[#allocation2 + $0x220] sm:$0xff]  ;;  %v2098_v62 = vld [vmem:[#allocation2 + $0x228] sm:$0xff]  ;;  %v181_v3 = vadd.f32 %v180_v39, %v2085_v53  ;;  %v194_v21 = vadd.f32 %v193_v40, %v2087_v54  ;;  %v2127_v8 = vmul.f32 %v87_v51, %v87_v51 }
  0x49   :  { %v2100_v43 = vld [vmem:[#allocation2 + $0x230] sm:$0xff]  ;;  %v207_v11 = vadd.f32 %v206_v48, %v2089_v38  ;;  %3531 = vst [vmem:[#allocation44_spill] sm:$0xff] %v2105_v10  ;;  %v2107_v36 = vld [vmem:[#allocation2 + $0x238] sm:$0xff]  ;;  %v2109_v4 = vld [vmem:[#allocation2 + $0x280] sm:$0xff]  ;;  %v220_v24 = vadd.f32 %v219_v55, %v2096_v61  ;;  %v233_v9 = vadd.f32 %v232_v23, %v2098_v62  ;;  %v2163_v41 = vmul.f32 %v2045_v58, %v2045_v58 }
  0x4a   :  { %v2111_v44 = vld [vmem:[#allocation2 + $0x288] sm:$0xff]  ;;  %v246_v20 = vadd.f32 %v245_v17, %v2100_v43  ;;  %3532 = vst [vmem:[#allocation45_spill] sm:$0xff] %v2116_v14  ;;  %v2118_v39 = vld [vmem:[#allocation2 + $0x290] sm:$0xff]  ;;  %v2120_v40 = vld [vmem:[#allocation2 + $0x298] sm:$0xff]  ;;  %v168_v48 = vadd.f32 %v167_v60, %v2109_v4  ;;  %v259_v12 = vadd.f32 %v258_v16, %v2107_v36  ;;  %v2140_v60 = vmul.f32 %v2038_v52, %v2038_v52 }
  0x4b   :  { %v2122_v45 = vld [vmem:[#allocation2 + $0x2a0] sm:$0xff]  ;;  %v182_v13 = vadd.f32 %v181_v3, %v2111_v44  ;;  %3533 = vst [vmem:[#allocation46_spill] sm:$0xff] %v2127_v8  ;;  %v2129_v55 = vld [vmem:[#allocation2 + $0x2a8] sm:$0xff]  ;;  %v2131_v23 = vld [vmem:[#allocation2 + $0x2b0] sm:$0xff]  ;;  %v195_v50 = vadd.f32 %v194_v21, %v2118_v39  ;;  %v208_v7 = vadd.f32 %v207_v11, %v2120_v40  ;;  %v2153_v11 = vmul.f32 %v2043_v57, %v2043_v57 }
  0x4c   :  { %v2133_v17 = vld [vmem:[#allocation2 + $0x2b8] sm:$0xff]  ;;  %v221_v6 = vadd.f32 %v220_v24, %v2122_v45  ;;  %3534 = vst [vmem:[#allocation47_spill] sm:$0xff] %v2140_v60  ;;  %v2142_v3 = vld [vmem:[#allocation2 + $0x300] sm:$0x1]  ;;  %v2144_v16 = vld [vmem:[#allocation2 + $0x308] sm:$0x1]  ;;  %v234_v5 = vadd.f32 %v233_v9, %v2129_v55  ;;  %v247_v22 = vadd.f32 %v246_v20, %v2131_v23  ;;  %v2167_v9 = vmul.f32 %v2047_v59, %v2047_v59 }
  0x4d   :  { %v2146_v51 = vld [vmem:[#allocation2 + $0x310] sm:$0x1]  ;;  %v260_v21 = vadd.f32 %v259_v12, %v2133_v17  ;;  %3535 = vst [vmem:[#allocation48_spill] sm:$0xff] %v2153_v11  ;;  %v2155_v24 = vld [vmem:[#allocation2 + $0x318] sm:$0x1]  ;;  %3536 = vst [vmem:[#allocation49_spill] sm:$0xff] %v2163_v41  ;;  %v2171_v12 = vmul.f32 %v2052_v0, %v2052_v0  ;;  %v2175_v20 = vmul.f32 %v2054_v1, %v2054_v1 }
  0x4e   :  { %v2157_v52 = vld [vmem:[#allocation2 + $0x320] sm:$0x1]  ;;  %v2159_v34 = vld [vmem:[#allocation2 + $0x328] sm:$0x1]  ;;  %3537 = vst [vmem:[#allocation50_spill] sm:$0xff] %v2167_v9  ;;  %v170_v57 = vsel %vm169_vm0, %v2142_v3, 0.0  ;;  %v2183_v58 = vmul.f32 %v2056_v2, %v2056_v2  ;;  %v2187_v59 = vmul.f32 %v2063_v30, %v2063_v30 }
  0x4f   :  { %3538 = vst [vmem:[#allocation51_spill] sm:$0xff] %v2171_v12  ;;  %3539 = vst [vmem:[#allocation52_spill] sm:$0xff] %v2175_v20  ;;  %v183_v33 = vsel %vm169_vm0, %v2144_v16, 0.0  ;;  %v2189_v0 = vld [vmem:[#allocation2 + $0x330] sm:$0x1]  ;;  %v171_v1 = vadd.f32 %v170_v57, %v168_v48  ;;  %v196_v11 = vsel %vm169_vm0, %v2146_v51, 0.0 }
  0x50   :  { %3540 = vst [vmem:[#allocation53_spill] sm:$0xff] %v2183_v58  ;;  %3541 = vst [vmem:[#allocation54_spill] sm:$0xff] %v2187_v59  ;;  %v2191_v9 = vld [vmem:[#allocation2 + $0x338] sm:$0x1]  ;;  %v184_v41 = vadd.f32 %v183_v33, %v182_v13  ;;  %v209_v20 = vsel %vm169_vm0, %v2155_v24, 0.0  ;;  %v197_v60 = vadd.f32 %v196_v11, %v195_v50  ;;  %v222_v2 = vsel %vm169_vm0, %v2157_v52, 0.0 }
  0x51   :  { %v210_v8 = vadd.f32 %v209_v20, %v208_v7  ;;  %v235_v30 = vsel %vm169_vm0, %v2159_v34, 0.0  ;;  %v172_v59 = vrot.slane %v171_v1, 4  ;;  %v223_v12 = vadd.f32 %v222_v2, %v221_v6 }
  0x52   :  { %v185_v58 = vrot.slane %v184_v41, 4  ;;  %v236_v29 = vadd.f32 %v235_v30, %v234_v5  ;;  %v198_v48 = vrot.slane %v197_v60, 4  ;;  %v248_v33 = vsel %vm169_vm0, %v2189_v0, 0.0 }
  0x53   :  { %v211_v13 = vrot.slane %v210_v8, 4  ;;  %v261_v57 = vsel %vm169_vm0, %v2191_v9, 0.0  ;;  %v173_v50 = vadd.f32 %v172_v59, %v171_v1  ;;  %v224_v11 = vrot.slane %v223_v12, 4 }
  0x54   :  { %v186_v7 = vadd.f32 %v185_v58, %v184_v41  ;;  %v237_v20 = vrot.slane %v236_v29, 4  ;;  %v199_v28 = vadd.f32 %v198_v48, %v197_v60  ;;  %v249_v10 = vadd.f32 %v248_v33, %v247_v22 }
  0x55   :  { %v212_v14 = vadd.f32 %v211_v13, %v210_v8  ;;  %v262_v63 = vadd.f32 %v261_v57, %v260_v21  ;;  %v174_v27 = vrot.slane %v173_v50, 2  ;;  %v225_v6 = vadd.f32 %v224_v11, %v223_v12 }
  0x56   :  { %v187_v56 = vrot.slane %v186_v7, 2  ;;  %v238_v5 = vadd.f32 %v237_v20, %v236_v29  ;;  %v200_v2 = vrot.slane %v199_v28, 2  ;;  %v250_v26 = vrot.slane %v249_v10, 4 }
  0x57   :  { %v213_v30 = vrot.slane %v212_v14, 2  ;;  %v263_v15 = vrot.slane %v262_v63, 4  ;;  %v175_v49 = vadd.f32 %v174_v27, %v173_v50  ;;  %v226_v42 = vrot.slane %v225_v6, 2 }
  0x58   :  { %v188_v25 = vadd.f32 %v187_v56, %v186_v7  ;;  %v239_v19 = vrot.slane %v238_v5, 2  ;;  %v201_v59 = vadd.f32 %v200_v2, %v199_v28  ;;  %v251_v58 = vadd.f32 %v250_v26, %v249_v10 }
  0x59   :  { %v214_v41 = vadd.f32 %v213_v30, %v212_v14  ;;  %v264_v1 = vadd.f32 %v263_v15, %v262_v63  ;;  %v176_v60 = vrot.slane %v175_v49, 1  ;;  %v227_v22 = vadd.f32 %v226_v42, %v225_v6  ;;  %v3542_v30 = vld [vmem:[#allocation25_spill] sm:$0xff] }
  0x5a   :  { %v189_v8 = vrot.slane %v188_v25, 1  ;;  %v240_v21 = vadd.f32 %v239_v19, %v238_v5  ;;  %v202_v48 = vrot.slane %v201_v59, 1  ;;  %v252_v12 = vrot.slane %v251_v58, 2 }
  0x5b   :  { %v215_v13 = vrot.slane %v214_v41, 1  ;;  %v265_v29 = vrot.slane %v264_v1, 2  ;;  %v2205_v33 = vadd.f32 %v176_v60, %v175_v49  ;;  %v228_v27 = vrot.slane %v227_v22, 1 }
  0x5c   :  { %v2207_v57 = vadd.f32 %v189_v8, %v188_v25  ;;  %v241_v56 = vrot.slane %v240_v21, 1  ;;  %v2209_v50 = vadd.f32 %v202_v48, %v201_v59  ;;  %v253_v10 = vadd.f32 %v252_v12, %v251_v58  ;;  %v3545_v58 = vld [vmem:[#allocation37_spill] sm:$0xff]  ;;  %v3547_v8 = vld [vmem:[#allocation31_spill] sm:$0xff] }
  0x5d   :  { %v2211_v28 = vadd.f32 %v215_v13, %v214_v41  ;;  %v266_v14 = vadd.f32 %v265_v29, %v264_v1  ;;  %v2213_v15 = vadd.f32 %v228_v27, %v227_v22  ;;  %v425_v19 = vmul.f32 %v2065_v31, %v2065_v31  ;;  %v3544_v41 = vld [vmem:[#allocation30_spill] sm:$0xff]  ;;  %v3551_v13 = vld [vmem:[#allocation44_spill] sm:$0xff]  ;;  %v3552_v29 = vld [vmem:[#allocation45_spill] sm:$0xff] }
  0x5e   :  { %v2215_v26 = vadd.f32 %v241_v56, %v240_v21  ;;  %v426_v42 = vmul.f32 %v2067_v32, %v2067_v32  ;;  %v254_v25 = vrot.slane %v253_v10, 1  ;;  %v2223_v63 = vmul.f32 %v2074_v46, %v2074_v46 }
  0x5f   :  { %v267_v49 = vrot.slane %v266_v14, 1  ;;  %v2227_v7 = vmul.f32 %v2076_v47, %v2076_v47  ;;  %v437_v11 = vmul.f32 %v2078_v37, %v2078_v37  ;;  %v438_v20 = vmul.f32 %v2085_v53, %v2085_v53 }
  0x60   :  { %v439_v31 = vmul.f32 %v2087_v54, %v2087_v54  ;;  %v440_v32 = vmul.f32 %v2089_v38, %v2089_v38  ;;  %v2237_v6 = vadd.f32 %v254_v25, %v253_v10  ;;  %v441_v47 = vmul.f32 %v2096_v61, %v2096_v61  ;;  %v3553_v10 = vld [vmem:[#allocation33_spill] sm:$0xff] }
  0x61   :  { %v2239_v46 = vadd.f32 %v267_v49, %v266_v14  ;;  %v442_v5 = vmul.f32 %v2098_v62, %v2098_v62  ;;  %v2247_v37 = vmul.f32 %v2100_v43, %v2100_v43  ;;  %v2251_v53 = vmul.f32 %v2107_v36, %v2107_v36  ;;  %v3554_v14 = vld [vmem:[#allocation40_spill] sm:$0xff]  ;;  %v3555_v49 = vld [vmem:[#allocation51_spill] sm:$0xff] }
  0x62   :  { %v453_v54 = vmul.f32 %v2109_v4, %v2109_v4  ;;  %v454_v38 = vmul.f32 %v2111_v44, %v2111_v44  ;;  %v455_v61 = vmul.f32 %v2118_v39, %v2118_v39  ;;  %v456_v62 = vmul.f32 %v2120_v40, %v2120_v40 }
  0x63   :  { %v457_v43 = vmul.f32 %v2122_v45, %v2122_v45  ;;  %v458_v2 = vmul.f32 %v2129_v55, %v2129_v55  ;;  %v2267_v36 = vmul.f32 %v2131_v23, %v2131_v23  ;;  %v2271_v4 = vmul.f32 %v2133_v17, %v2133_v17 }
  0x64   :  { %v469_v44 = vmul.f32 %v2142_v3, %v2142_v3  ;;  %v470_v39 = vmul.f32 %v2144_v16, %v2144_v16  ;;  %v471_v40 = vmul.f32 %v2146_v51, %v2146_v51  ;;  %v472_v45 = vmul.f32 %v2155_v24, %v2155_v24  ;;  %v3543_v24 = vld [vmem:[#allocation36_spill] sm:$0xff] }
  0x65   :  { %v473_v55 = vmul.f32 %v2157_v52, %v2157_v52  ;;  %v474_v23 = vmul.f32 %v2159_v34, %v2159_v34  ;;  %v475_v17 = vmul.f32 %v2189_v0, %v2189_v0  ;;  %v2289_v3 = vmul.f32 %v2191_v9, %v2191_v9  ;;  %v3546_v0 = vld [vmem:[#allocation43_spill] sm:$0xff]  ;;  %v3548_v9 = vld [vmem:[#allocation38_spill] sm:$0xff] }
  0x66   :  { %v485_v16 = vadd.f32 %v2026_v35, %v1987_v18  ;;  %v490_v51 = vsel %vm169_vm0, %v469_v44, 0.0  ;;  %v498_v59 = vadd.f32 %v3543_v24, %v3542_v30  ;;  %v503_v52 = vsel %vm169_vm0, %v470_v39, 0.0  ;;  %v3549_v18 = vld [vmem:[#allocation32_spill] sm:$0xff]  ;;  %v3550_v35 = vld [vmem:[#allocation39_spill] sm:$0xff]  ;;  %v3556_v39 = vld [vmem:[#allocation46_spill] sm:$0xff] }
  0x67   :  { %v511_v34 = vadd.f32 %v3545_v58, %v3544_v41  ;;  %v516_v1 = vsel %vm169_vm0, %v471_v40, 0.0  ;;  %v524_v22 = vadd.f32 %v3548_v9, %v3547_v8  ;;  %v529_v21 = vsel %vm169_vm0, %v472_v45, 0.0  ;;  %v3558_v24 = vld [vmem:[#allocation52_spill] sm:$0xff]  ;;  %v3559_v58 = vld [vmem:[#allocation53_spill] sm:$0xff] }
  0x68   :  { %v486_v60 = vadd.f32 %v485_v16, %v3546_v0  ;;  %v537_v48 = vadd.f32 %v3550_v35, %v3549_v18  ;;  %v499_v12 = vadd.f32 %v498_v59, %v3551_v13  ;;  %v542_v56 = vsel %vm169_vm0, %v473_v55, 0.0  ;;  %v3557_v16 = vld [vmem:[#allocation47_spill] sm:$0xff]  ;;  %v3560_v59 = vld [vmem:[#allocation48_spill] sm:$0xff]  ;;  %v3562_v9 = vld [vmem:[#allocation41_spill] sm:$0xff] }
  0x69   :  { %v512_v27 = vadd.f32 %v511_v34, %v3552_v29  ;;  %v550_v25 = vadd.f32 %v3554_v14, %v3553_v10  ;;  %v525_v40 = vadd.f32 %v524_v22, %v3556_v39  ;;  %v555_v45 = vsel %vm169_vm0, %v474_v23, 0.0  ;;  %v3561_v34 = vld [vmem:[#allocation34_spill] sm:$0xff]  ;;  %v3564_v14 = vld [vmem:[#allocation49_spill] sm:$0xff] }
  0x6a   :  { %v487_v44 = vadd.f32 %v486_v60, %v3555_v49  ;;  %v538_v30 = vadd.f32 %v537_v48, %v3557_v16  ;;  %v500_v41 = vadd.f32 %v499_v12, %v3558_v24  ;;  %v563_v55 = vadd.f32 %v3562_v9, %v3561_v34  ;;  %v3563_v35 = vld [vmem:[#allocation54_spill] sm:$0xff] }
  0x6b   :  { %v513_v0 = vadd.f32 %v512_v27, %v3559_v58  ;;  %v551_v8 = vadd.f32 %v550_v25, %v3560_v59  ;;  %v526_v13 = vadd.f32 %v525_v40, %v3563_v35  ;;  %v568_v60 = vsel %vm169_vm0, %v475_v17, 0.0  ;;  %v3565_v27 = vld [vmem:[#allocation35_spill] sm:$0xff]  ;;  %v3566_v16 = vld [vmem:[#allocation42_spill] sm:$0xff] }
  0x6c   :  { %v488_v18 = vadd.f32 %v487_v44, %v437_v11  ;;  %v539_v29 = vadd.f32 %v538_v30, %v425_v19  ;;  %v501_v22 = vadd.f32 %v500_v41, %v438_v20  ;;  %v564_v23 = vadd.f32 %v563_v55, %v3564_v14  ;;  %v3567_v17 = vld [vmem:[#allocation50_spill] sm:$0xff] }
  0x6d   :  { %v514_v10 = vadd.f32 %v513_v0, %v439_v31  ;;  %v552_v48 = vadd.f32 %v551_v8, %v426_v42  ;;  %v527_v12 = vadd.f32 %v526_v13, %v440_v32  ;;  %v576_v25 = vadd.f32 %v3566_v16, %v3565_v27 }
  0x6e   :  { %v489_v49 = vadd.f32 %v488_v18, %v453_v54  ;;  %v540_v39 = vadd.f32 %v539_v29, %v441_v47  ;;  %v502_v24 = vadd.f32 %v501_v22, %v454_v38  ;;  %v565_v11 = vadd.f32 %v564_v23, %v2223_v63 }
  0x6f   :  { %v515_v58 = vadd.f32 %v514_v10, %v455_v61  ;;  %v553_v59 = vadd.f32 %v552_v48, %v442_v5  ;;  %v528_v19 = vadd.f32 %v527_v12, %v456_v62  ;;  %v577_v20 = vadd.f32 %v576_v25, %v3567_v17 }
  0x70   :  { %v491_v44 = vadd.f32 %v490_v51, %v489_v49  ;;  %v541_v40 = vadd.f32 %v540_v39, %v457_v43  ;;  %v504_v31 = vadd.f32 %v503_v52, %v502_v24  ;;  %v566_v54 = vadd.f32 %v565_v11, %v2247_v37 }
  0x71   :  { %v517_v42 = vadd.f32 %v516_v1, %v515_v58  ;;  %v554_v30 = vadd.f32 %v553_v59, %v458_v2  ;;  %v530_v47 = vadd.f32 %v529_v21, %v528_v19  ;;  %v578_v0 = vadd.f32 %v577_v20, %v2227_v7 }
  0x72   :  { %v492_v32 = vrot.slane %v491_v44, 4  ;;  %v543_v41 = vadd.f32 %v542_v56, %v541_v40  ;;  %v505_v38 = vrot.slane %v504_v31, 4  ;;  %v567_v63 = vadd.f32 %v566_v54, %v2267_v36 }
  0x73   :  { %v518_v61 = vrot.slane %v517_v42, 4  ;;  %v556_v5 = vadd.f32 %v555_v45, %v554_v30  ;;  %v531_v62 = vrot.slane %v530_v47, 4  ;;  %v579_v8 = vadd.f32 %v578_v0, %v2251_v53 }
  0x74   :  { %v493_v51 = vadd.f32 %v492_v32, %v491_v44  ;;  %v544_v43 = vrot.slane %v543_v41, 4  ;;  %v506_v52 = vadd.f32 %v505_v38, %v504_v31  ;;  %v569_v34 = vadd.f32 %v568_v60, %v567_v63 }
  0x75   :  { %v519_v1 = vadd.f32 %v518_v61, %v517_v42  ;;  %v557_v2 = vrot.slane %v556_v5, 4  ;;  %v532_v9 = vadd.f32 %v531_v62, %v530_v47  ;;  %v580_v56 = vadd.f32 %v579_v8, %v2271_v4 }
  0x76   :  { %v494_v37 = vrot.slane %v493_v51, 2  ;;  %v545_v21 = vadd.f32 %v544_v43, %v543_v41  ;;  %v507_v7 = vrot.slane %v506_v52, 2  ;;  %v570_v45 = vrot.slane %v569_v34, 4 }
  0x77   :  { %v520_v55 = vrot.slane %v519_v1, 2  ;;  %v558_v18 = vadd.f32 %v557_v2, %v556_v5  ;;  %v533_v36 = vrot.slane %v532_v9, 2  ;;  %v581_v29 = vsel %vm169_vm0, %v2289_v3, 0.0 }
  0x78   :  { %v495_v35 = vadd.f32 %v494_v37, %v493_v51  ;;  %v546_v13 = vrot.slane %v545_v21, 2  ;;  %v508_v53 = vadd.f32 %v507_v7, %v506_v52  ;;  %v571_v48 = vadd.f32 %v570_v45, %v569_v34 }
  0x79   :  { %v521_v22 = vadd.f32 %v520_v55, %v519_v1  ;;  %v559_v10 = vrot.slane %v558_v18, 2  ;;  %v534_v14 = vadd.f32 %v533_v36, %v532_v9  ;;  %v582_v49 = vadd.f32 %v581_v29, %v580_v56 }
  0x7a   :  { %v496_v60 = vrot.slane %v495_v35, 1  ;;  %v547_v23 = vadd.f32 %v546_v13, %v545_v21  ;;  %v509_v12 = vrot.slane %v508_v53, 1  ;;  %v572_v27 = vrot.slane %v571_v48, 2 }
  0x7b   :  { %v522_v4 = vrot.slane %v521_v22, 1  ;;  %v560_v39 = vadd.f32 %v559_v10, %v558_v18  ;;  %v535_v25 = vrot.slane %v534_v14, 1  ;;  %v583_v58 = vrot.slane %v582_v49, 4 }
  0x7c   :  { %v497_v16 = vadd.f32 %v496_v60, %v495_v35  ;;  %v548_v24 = vrot.slane %v547_v23, 1  ;;  %v510_v59 = vadd.f32 %v509_v12, %v508_v53  ;;  %v573_v3 = vadd.f32 %v572_v27, %v571_v48  ;;  %v2374_v53 = vld [vmem:[#allocation5] sm:$0xff] }
  0x7d   :  { %v523_v11 = vadd.f32 %v522_v4, %v521_v22  ;;  %v561_v44 = vrot.slane %v560_v39, 1  ;;  %v536_v19 = vadd.f32 %v535_v25, %v534_v14  ;;  %v584_v17 = vadd.f32 %v583_v58, %v582_v49  ;;  %v2376_v4 = vld [vmem:[#allocation2 + $0x40] sm:$0xff] }
  0x7e   :  { %v549_v40 = vadd.f32 %v548_v24, %v547_v23  ;;  %v2335_v20 = vmul.f32 0.020408163, %v2205_v33  ;;  %v574_v42 = vrot.slane %v573_v3, 1  ;;  %v2338_v30 = vmul.f32 0.020408163, %v2207_v57  ;;  %v3568_v24 = vld [vmem:[#allocation12_spill] sm:$0xff] }
  0x7f   :  { %v562_v31 = vadd.f32 %v561_v44, %v560_v39  ;;  %v2341_v54 = vmul.f32 0.020408163, %v2209_v50  ;;  %v585_v32 = vrot.slane %v584_v17, 2  ;;  %v2344_v47 = vmul.f32 0.020408163, %v2211_v28  ;;  %v2378_v39 = vld [vmem:[#allocation2 + $0xc0] sm:$0xff] }
  0x80   :  { %v2347_v41 = vmul.f32 0.020408163, %v2213_v15  ;;  %v725_v0 = vmul.f32 %v2335_v20, %v2335_v20  ;;  %v575_v33 = vadd.f32 %v574_v42, %v573_v3  ;;  %v2352_v38 = vmul.f32 0.020408163, %v2215_v26  ;;  %v2392_v42 = vld [vmem:[#allocation2 + $0x340] sm:$0x1] }
  0x81   :  { %v2355_v57 = vmul.f32 0.020408163, %v2237_v6  ;;  %v2358_v50 = vmul.f32 0.020408163, %v2239_v46  ;;  %v586_v61 = vadd.f32 %v585_v32, %v584_v17  ;;  %v709_v5 = vmul.f32 0.020408163, %v497_v16 }
  0x82   :  { %v710_v28 = vmul.f32 0.020408163, %v510_v59  ;;  %v711_v63 = vmul.f32 0.020408163, %v523_v11  ;;  %v712_v51 = vmul.f32 0.020408163, %v536_v19  ;;  %v726_v43 = vmul.f32 %v2338_v30, %v2338_v30 }
  0x83   :  { %v713_v15 = vmul.f32 0.020408163, %v549_v40  ;;  %v714_v62 = vmul.f32 0.020408163, %v562_v31  ;;  %v587_v8 = vrot.slane %v586_v61, 1  ;;  %v727_v26 = vmul.f32 %v2341_v54, %v2341_v54  ;;  %v2382_v59 = vld [vmem:[#allocation2 + $0x48] sm:$0xff] }
  0x84   :  { %v715_v52 = vmul.f32 0.020408163, %v575_v33  ;;  %v728_v6 = vmul.f32 %v2344_v47, %v2344_v47  ;;  %v729_v46 = vmul.f32 %v2347_v41, %v2347_v41  ;;  %v730_v1 = vmul.f32 %v2352_v38, %v2352_v38  ;;  %v2384_v11 = vld [vmem:[#allocation2 + $0x50] sm:$0xff]  ;;  %v3569_v19 = vld [vmem:[#allocation13_spill] sm:$0xff]  ;;  %v2388_v17 = vld [vmem:[#allocation2 + $0x58] sm:$0xff]  ;;  %3570 = vst [vmem:[#allocation25_spill] sm:$0xff] %v2392_v42 }
  0x85   :  { %v731_v2 = vmul.f32 %v2355_v57, %v2355_v57  ;;  %v732_v34 = vmul.f32 %v2358_v50, %v2358_v50  ;;  %v588_v37 = vadd.f32 %v587_v8, %v586_v61  ;;  %v741_v9 = vsub.f32 %v709_v5, %v725_v0  ;;  %v2390_v31 = vld [vmem:[#allocation2 + $0xc8] sm:$0xff]  ;;  %v3571_v32 = vld [vmem:[#allocation14_spill] sm:$0xff]  ;;  %v3572_v33 = vld [vmem:[#allocation15_spill] sm:$0xff] }
  0x86   :  { %v742_v21 = vsub.f32 %v710_v28, %v726_v43  ;;  %v743_v56 = vsub.f32 %v711_v63, %v727_v26  ;;  %v744_v7 = vsub.f32 %v712_v51, %v728_v6  ;;  %v745_v55 = vsub.f32 %v713_v15, %v729_v46  ;;  %v3573_v5 = vld [vmem:[#allocation19_spill] sm:$0xff]  ;;  %v2400_v63 = vld [vmem:[#allocation2 + $0xd0] sm:$0xff]  ;;  %v2404_v15 = vld [vmem:[#allocation2 + $0x348] sm:$0x1] }
  0x87   :  { %v746_v18 = vsub.f32 %v714_v62, %v730_v1  ;;  %v747_v45 = vsub.f32 %v715_v52, %v731_v2  ;;  %v716_v35 = vmul.f32 0.020408163, %v588_v37  ;;  %v757_v36 = vmax.f32 %v741_v9, 0.0  ;;  %v2402_v51 = vld [vmem:[#allocation2 + $0xd8] sm:$0xff]  ;;  %3574 = vst [vmem:[#allocation36_spill] sm:$0xff] %v2404_v15  ;;  %v3575_v43 = vld [vmem:[#allocation20_spill] sm:$0xff] }
  0x88   :  { %v758_v13 = vmax.f32 %v742_v21, 0.0  ;;  %v759_v29 = vmax.f32 %v743_v56, 0.0  ;;  %v760_v22 = vmax.f32 %v744_v7, 0.0  ;;  %v761_v10 = vmax.f32 %v745_v55, 0.0  ;;  %v3576_v52 = vld [vmem:[#allocation21_spill] sm:$0xff]  ;;  %v2410_v6 = vld [vmem:[#allocation2 + $0x60] sm:$0xff] }
  0x89   :  { %v762_v48 = vmax.f32 %v746_v18, 0.0  ;;  %v763_v60 = vmax.f32 %v747_v45, 0.0  ;;  %v748_v14 = vsub.f32 %v716_v35, %v732_v34  ;;  %v773_v23 = vadd.f32 1e-05, %v757_v36  ;;  %v2412_v46 = vld [vmem:[#allocation2 + $0xe0] sm:$0xff]  ;;  %v3579_v34 = vld [vmem:[#allocation26_spill] sm:$0xff] }
  0x8a   :  { %v774_v49 = vadd.f32 1e-05, %v758_v13  ;;  %v775_v12 = vadd.f32 1e-05, %v759_v29  ;;  %v776_v27 = vadd.f32 1e-05, %v760_v22  ;;  %v269_v18 = vadd.f32 %v2378_v39, %v2376_v4 }
  0x8b   :  { %v777_v16 = vadd.f32 1e-05, %v761_v10  ;;  %v778_v25 = vadd.f32 1e-05, %v762_v48  ;;  %v764_v44 = vmax.f32 %v748_v14, 0.0  ;;  %1660 = vrsqrt.f32 %v773_v23  ;;  %v2414_v1 = vld [vmem:[#allocation2 + $0x140] sm:$0xff] }
  0x8c   :  { %v779_v3 = vadd.f32 1e-05, %v763_v60  ;;  %1662 = vrsqrt.f32 %v774_v49  ;;  %3577 = vst [vmem:[#allocation30_spill] sm:$0xff] %v2414_v1  ;;  %v2416_v2 = vld [vmem:[#allocation2 + $0x350] sm:$0x1]  ;;  %v2420_v9 = vld [vmem:[#allocation2 + $0x68] sm:$0xff]  ;;  %v282_v29 = vadd.f32 %v2390_v31, %v2382_v59  ;;  %v295_v10 = vadd.f32 %v2400_v63, %v2384_v11 }
  0x8d   :  { %v780_v62 = vadd.f32 1e-05, %v764_v44  ;;  %1664 = vrsqrt.f32 %v775_v12  ;;  %3578 = vst [vmem:[#allocation37_spill] sm:$0xff] %v2416_v2  ;;  %v2422_v21 = vld [vmem:[#allocation2 + $0xe8] sm:$0xff]  ;;  %v2426_v7 = vld [vmem:[#allocation2 + $0x150] sm:$0xff]  ;;  %v2434_v45 = vsel %vm169_vm0, %v2392_v42, 0.0  ;;  %v270_v12 = vadd.f32 %v269_v18, %v2414_v1 }
  0x8e   :  { %1666 = vrsqrt.f32 %v776_v27  ;;  %v2424_v56 = vld [vmem:[#allocation2 + $0x148] sm:$0xff]  ;;  %3581 = vst [vmem:[#allocation31_spill] sm:$0xff] %v2426_v7  ;;  %v2428_v55 = vld [vmem:[#allocation2 + $0x358] sm:$0x1]  ;;  %v2438_v36 = vld [vmem:[#allocation2 + $0x160] sm:$0xff]  ;;  %v2446_v22 = vsel %vm169_vm0, %v2404_v15, 0.0  ;;  %v296_v8 = vadd.f32 %v295_v10, %v2426_v7 }
  0x8f   :  { %3580 = vst [vmem:[#allocation43_spill] sm:$0xff] %v2424_v56  ;;  %3582 = vst [vmem:[#allocation38_spill] sm:$0xff] %v2428_v55  ;;  %1668 = vrsqrt.f32 %v777_v16  ;;  %v2436_v35 = vld [vmem:[#allocation2 + $0x158] sm:$0xff]  ;;  %v2440_v13 = vld [vmem:[#allocation2 + $0x1c0] sm:$0xff]  ;;  %v2463_v27 = vsel %vm169_vm0, %v2416_v2, 0.0  ;;  %v308_v16 = vadd.f32 %v2402_v51, %v2388_v17  ;;  %v283_v26 = vadd.f32 %v282_v29, %v2424_v56 }
  0x90   :  { %3583 = vst [vmem:[#allocation32_spill] sm:$0xff] %v2436_v35  ;;  %3584 = vst [vmem:[#allocation39_spill] sm:$0xff] %v2440_v13  ;;  %1670 = vrsqrt.f32 %v778_v25  ;;  %v2450_v48 = vld [vmem:[#allocation2 + $0x70] sm:$0xff]  ;;  %v2454_v14 = vld [vmem:[#allocation2 + $0x1c8] sm:$0xff]  ;;  %v2477_v18 = vsel %vm169_vm0, %v2428_v55, 0.0  ;;  %v271_v0 = vadd.f32 %v270_v12, %v2440_v13  ;;  %v321_v29 = vadd.f32 %v2412_v46, %v2410_v6 }
  0x91   :  { %v2452_v60 = vld [vmem:[#allocation2 + $0xf0] sm:$0xff]  ;;  %3585 = vst [vmem:[#allocation44_spill] sm:$0xff] %v2454_v14  ;;  %v2458_v49 = vld [vmem:[#allocation2 + $0x360] sm:$0x1]  ;;  %1672 = vrsqrt.f32 %v779_v3  ;;  %v2467_v25 = vld [vmem:[#allocation2 + $0x1d8] sm:$0xff]  ;;  %v309_v40 = vadd.f32 %v308_v16, %v2436_v35  ;;  %v334_v12 = vadd.f32 %v2422_v21, %v2420_v9 }
  0x92   :  { %v2456_v23 = vld [vmem:[#allocation2 + $0x1d0] sm:$0xff]  ;;  %3587 = vst [vmem:[#allocation33_spill] sm:$0xff] %v2458_v49  ;;  %3588 = vst [vmem:[#allocation40_spill] sm:$0xff] %v2467_v25  ;;  %v2469_v44 = vld [vmem:[#allocation2 + $0x240] sm:$0xff]  ;;  %1674 = vrsqrt.f32 %v780_v62  ;;  %v284_v62 = vadd.f32 %v283_v26, %v2454_v14  ;;  %v2499_v15 = vsel %vm169_vm0, %v2458_v49, 0.0  ;;  %v322_v26 = vadd.f32 %v321_v29, %v2438_v36 }
  0x93   :  { %3586 = vst [vmem:[#allocation45_spill] sm:$0xff] %v2456_v23  ;;  %3589 = vst [vmem:[#allocation51_spill] sm:$0xff] %v2469_v44  ;;  %v2471_v37 = vld [vmem:[#allocation2 + $0x368] sm:$0x1]  ;;  %v2483_v3 = vld [vmem:[#allocation2 + $0x250] sm:$0xff]  ;;  %v297_v2 = vadd.f32 %v296_v8, %v2456_v23  ;;  %v272_v35 = vadd.f32 %v271_v0, %v2469_v44  ;;  %v310_v7 = vadd.f32 %v309_v40, %v2467_v25 }
  0x94   :  { %3590 = vst [vmem:[#allocation46_spill] sm:$0xff] %v2471_v37  ;;  %v2479_v28 = vld [vmem:[#allocation2 + $0x168] sm:$0xff]  ;;  %3593 = vst [vmem:[#allocation53_spill] sm:$0xff] %v2483_v3  ;;  %v2489_v58 = vld [vmem:[#allocation2 + $0x1e0] sm:$0xff]  ;;  %v2514_v8 = vsel %vm169_vm0, %v2471_v37, 0.0  ;;  %v2521_v1 = vadd.f32 %v2452_v60, %v2450_v48  ;;  %v3600_v40 = vrot.slane %v2374_v53, %v3568_v24 }
  0x95   :  { %3591 = vst [vmem:[#allocation47_spill] sm:$0xff] %v2479_v28  ;;  %v2481_v61 = vld [vmem:[#allocation2 + $0x248] sm:$0xff]  ;;  %3594 = vst [vmem:[#allocation48_spill] sm:$0xff] %v2489_v58  ;;  %v2491_v10 = vld [vmem:[#allocation2 + $0x258] sm:$0xff]  ;;  %v1661_v49 = vpop.eup %1660  ;;  %v298_v14 = vadd.f32 %v297_v2, %v2483_v3  ;;  %v335_v56 = vadd.f32 %v334_v12, %v2479_v28  ;;  %v3601_v12 = vrot.slane %v2374_v53, %v3569_v19 }
  0x96   :  { %3592 = vst [vmem:[#allocation52_spill] sm:$0xff] %v2481_v61  ;;  %3595 = vst [vmem:[#allocation34_spill] sm:$0xff] %v2491_v10  ;;  %v2493_v55 = vld [vmem:[#allocation2 + $0x2c0] sm:$0xff]  ;;  %v2503_v16 = vld [vmem:[#allocation2 + $0x1e8] sm:$0xff]  ;;  %v285_v23 = vadd.f32 %v284_v62, %v2481_v61  ;;  %v1663_v0 = vpop.eup %1662  ;;  %v889_v29 = vmul.f32 %v1661_v49, %v3600_v40  ;;  %v2528_v37 = vadd.f32 %v310_v7, %v2491_v10 }
  0x97   :  { %3596 = vst [vmem:[#allocation41_spill] sm:$0xff] %v2493_v55  ;;  %3597 = vst [vmem:[#allocation54_spill] sm:$0xff] %v2503_v16  ;;  %v2505_v42 = vld [vmem:[#allocation2 + $0x2c8] sm:$0xff]  ;;  %v2507_v13 = vld [vmem:[#allocation2 + $0x2d0] sm:$0xff]  ;;  %v273_v44 = vadd.f32 %v272_v35, %v2493_v55  ;;  %v2531_v62 = vadd.f32 %v322_v26, %v2489_v58  ;;  %v1665_v2 = vpop.eup %1664  ;;  %v890_v3 = vmul.f32 %v1663_v0, %v3601_v12 }
  0x98   :  { %3598 = vst [vmem:[#allocation49_spill] sm:$0xff] %v2505_v42  ;;  %3599 = vst [vmem:[#allocation35_spill] sm:$0xff] %v2507_v13  ;;  %v286_v61 = vadd.f32 %v285_v23, %v2505_v42  ;;  %v299_v25 = vadd.f32 %v298_v14, %v2507_v13  ;;  %v2539_v28 = vadd.f32 %v335_v56, %v2503_v16  ;;  %v1667_v49 = vpop.eup %1666  ;;  %v3610_v42 = vld [vmem:[#allocation17_spill] sm:$0xff] }
  0x99   :  { %v3602_v7 = vrot.slane %v2374_v53, %v3571_v32  ;;  %v907_v26 = vmul.f32 %v889_v29, %v2335_v20  ;;  %v2546_v40 = vrot.slane %v889_v29, %v3568_v24  ;;  %v275_v55 = vadd.f32 %v2434_v45, %v273_v44  ;;  %v1669_v0 = vpop.eup %1668  ;;  %v3607_v45 = vld [vmem:[#allocation16_spill] sm:$0xff] }
  0x9a   :  { %v3604_v23 = vrot.slane %v2374_v53, %v3572_v33  ;;  %v908_v56 = vmul.f32 %v890_v3, %v2338_v30  ;;  %v2554_v12 = vrot.slane %v890_v3, %v3568_v24  ;;  %v288_v13 = vadd.f32 %v2446_v22, %v286_v61 }
  0x9b   :  { %v891_v35 = vmul.f32 %v1665_v2, %v3602_v7  ;;  %3603 = vst [vmem:[#allocation42_spill] sm:$0xff] %v2546_v40  ;;  %v1671_v2 = vpop.eup %1670  ;;  %v3606_v20 = vrot.slane %v2374_v53, %v3573_v5  ;;  %v2563_v44 = vmul.f32 %v2546_v40, %v3607_v45  ;;  %v3609_v3 = vrot.slane %v2374_v53, %v3575_v43  ;;  %v3612_v40 = vld [vmem:[#allocation18_spill] sm:$0xff] }
  0x9c   :  { %v892_v14 = vmul.f32 %v1667_v49, %v3604_v23  ;;  %3605 = vst [vmem:[#allocation50_spill] sm:$0xff] %v2554_v12  ;;  %v1673_v30 = vpop.eup %1672  ;;  %v939_v22 = vcombine.low %v907_v26, %v908_v56  ;;  %v289_v16 = vrot.slane %v288_v13, 4 }
  0x9d   :  { %v893_v29 = vmul.f32 %v1669_v0, %v3606_v20  ;;  %v909_v7 = vmul.f32 %v891_v35, %v2341_v54  ;;  %v2566_v49 = vrot.slane %v891_v35, %v3568_v24  ;;  %v894_v23 = vmul.f32 %v1671_v2, %v3609_v3  ;;  %v1675_v54 = vpop.eup %1674  ;;  %v3615_v3 = vld [vmem:[#allocation27_spill] sm:$0xff] }
  0x9e   :  { %v910_v61 = vmul.f32 %v892_v14, %v2344_v47  ;;  %v2574_v0 = vmul.f32 %v2554_v12, %v3610_v42  ;;  %v3611_v20 = vrot.slane %v2374_v53, %v3576_v52  ;;  %v2585_v2 = vrot.slane %v892_v14, %v3568_v24 }
  0x9f   :  { %3608 = vst [vmem:[#allocation16_spill] sm:$0xff] %v2566_v49  ;;  %v911_v35 = vmul.f32 %v893_v29, %v2347_v41  ;;  %v2582_v10 = vmul.f32 %v2566_v49, %v3612_v40  ;;  %v3614_v47 = vrot.slane %v2374_v53, %v3579_v34  ;;  %v912_v42 = vmul.f32 %v894_v23, %v2352_v38 }
  0xa0   :  { %v895_v45 = vmul.f32 %v1673_v30, %v3611_v20  ;;  %3613 = vst [vmem:[#allocation17_spill] sm:$0xff] %v2585_v2  ;;  %v940_v56 = vcombine.low %v909_v7, %v910_v61  ;;  %v949_v12 = vrot.slane %v939_v22, %v3615_v3  ;;  %v3616_v20 = vld [vmem:[#allocation22_spill] sm:$0xff]  ;;  %v2598_v40 = vrot.slane %v893_v29, %v3568_v24  ;;  %v3620_v61 = vld [vmem:[#allocation23_spill] sm:$0xff]  ;;  %v3621_v22 = vld [vmem:[#allocation24_spill] sm:$0xff] }
  0xa1   :  { %v896_v26 = vmul.f32 %v1675_v54, %v3614_v47  ;;  %v2595_v41 = vmul.f32 %v2585_v2, %v3616_v20  ;;  %v2601_v14 = vrot.slane %v894_v23, %v3568_v24  ;;  %v941_v54 = vcombine.low %v911_v35, %v912_v42  ;;  %v2619_v23 = vld [vmem:[#allocation2 + $0x260] sm:$0xff] }
  0xa2   :  { %v913_v30 = vmul.f32 %v895_v45, %v2355_v57  ;;  %3617 = vst [vmem:[#allocation18_spill] sm:$0xff] %v2598_v40  ;;  %v956_v38 = vrot.slane %v940_v56, %v3615_v3  ;;  %v2606_v7 = vrot.slane %v895_v45, %v3568_v24  ;;  %v2610_v57 = vmul.f32 %v2598_v40, %v3620_v61  ;;  %v3625_v20 = vld [vmem:[#allocation28_spill] sm:$0xff]  ;;  %v2628_v40 = vld [vmem:[#allocation2 + $0x268] sm:$0xff] }
  0xa3   :  { %3618 = vst [vmem:[#allocation22_spill] sm:$0xff] %v2601_v14  ;;  %v914_v53 = vmul.f32 %v896_v26, %v2358_v50  ;;  %v2614_v47 = vmul.f32 %v2601_v14, %v3621_v22  ;;  %v2617_v29 = vrot.slane %v896_v26, %v3568_v24  ;;  %3623 = vst [vmem:[#allocation24_spill] sm:$0xff] %v2619_v23  ;;  %v2621_v50 = vld [vmem:[#allocation2 + $0x2d8] sm:$0xff]  ;;  %v276_v35 = vrot.slane %v275_v55, 4  ;;  %v3627_v22 = vld [vmem:[#allocation29_spill] sm:$0xff] }
  0xa4   :  { %3619 = vst [vmem:[#allocation55_spill] sm:$0xff] %v2606_v7  ;;  %3624 = vst [vmem:[#allocation56_spill] sm:$0xff] %v2621_v50  ;;  %v963_v45 = vrot.slane %v941_v54, %v3615_v3  ;;  %v971_v56 = vcombine.low %v949_v12, %v956_v38  ;;  %v2626_v61 = vmul.f32 %v2606_v7, %v3625_v20  ;;  %v2634_v26 = vld [vmem:[#allocation2 + $0x170] sm:$0xff]  ;;  %v2636_v2 = vld [vmem:[#allocation2 + $0x2e0] sm:$0xff] }
  0xa5   :  { %3622 = vst [vmem:[#allocation23_spill] sm:$0xff] %v2617_v29  ;;  %v942_v42 = vcombine.low %v913_v30, %v914_v53  ;;  %3626 = vst [vmem:[#allocation28_spill] sm:$0xff] %v2628_v40  ;;  %v2632_v14 = vmul.f32 %v2617_v29, %v3627_v22  ;;  %v277_v49 = vadd.f32 %v276_v35, %v275_v55  ;;  %v2641_v54 = vld [vmem:[#allocation2 + $0x2e8] sm:$0xff]  ;;  %v2647_v22 = vld [vmem:[#allocation2 + $0x1f0] sm:$0xff] }
  0xa6   :  { %3628 = vst [vmem:[#allocation29_spill] sm:$0xff] %v2634_v26  ;;  %3629 = vst [vmem:[#allocation57_spill] sm:$0xff] %v2636_v2  ;;  %v301_v30 = vadd.f32 %v2463_v27, %v299_v25  ;;  %v979_v53 = vrot.slane %v971_v56, %v3615_v3  ;;  %v312_v38 = vadd.f32 %v2528_v37, %v2621_v50  ;;  %v2655_v37 = vld [vmem:[#allocation2 + $0x270] sm:$0xff] }
  0xa7   :  { %v970_v12 = vrot.slane %v942_v42, %v3615_v3  ;;  %3630 = vst [vmem:[#allocation58_spill] sm:$0xff] %v2641_v54  ;;  %v324_v20 = vadd.f32 %v2531_v62, %v2619_v23  ;;  %v278_v29 = vrot.slane %v277_v49, 2  ;;  %v290_v7 = vadd.f32 %v289_v16, %v288_v13 }
  0xa8   :  { %v302_v55 = vrot.slane %v301_v30, 4  ;;  %v337_v27 = vadd.f32 %v2539_v28, %v2628_v40  ;;  %v314_v35 = vadd.f32 %v2477_v18, %v312_v38  ;;  %v348_v56 = vadd.f32 %v2521_v1, %v2634_v26  ;;  %v905_v18 = vld [vmem:[#allocation7] sm:$0xff] }
  0xa9   :  { %v972_v25 = vcombine.low %v963_v45, %v970_v12  ;;  %v325_v42 = vadd.f32 %v324_v20, %v2636_v2  ;;  %v279_v50 = vadd.f32 %v278_v29, %v277_v49  ;;  %v291_v62 = vrot.slane %v290_v7, 2  ;;  %v2661_v12 = vld [vmem:[#allocation2 + $0x2f0] sm:$0xff] }
  0xaa   :  { %v303_v23 = vadd.f32 %v302_v55, %v301_v30  ;;  %v338_v58 = vadd.f32 %v337_v27, %v2641_v54  ;;  %v315_v16 = vrot.slane %v314_v35, 4  ;;  %v349_v45 = vadd.f32 %v348_v56, %v2647_v22  ;;  %v2664_v29 = vld [vmem:[#allocation2 + $0x370] sm:$0x1] }
  0xab   :  { %v986_v13 = vrot.slane %v972_v25, %v3615_v3  ;;  %v327_v28 = vadd.f32 %v2499_v15, %v325_v42  ;;  %v280_v38 = vrot.slane %v279_v50, 1  ;;  %v292_v20 = vadd.f32 %v291_v62, %v290_v7 }
  0xac   :  { %v304_v1 = vrot.slane %v303_v23, 2  ;;  %v340_v2 = vadd.f32 %v2514_v8, %v338_v58  ;;  %v316_v30 = vadd.f32 %v315_v16, %v314_v35  ;;  %v350_v27 = vadd.f32 %v349_v45, %v2655_v37 }
  0xad   :  { %v987_v49 = vcombine.low %v979_v53, %v986_v13  ;;  %v328_v55 = vrot.slane %v327_v28, 4  ;;  %v2667_v25 = vadd.f32 %v280_v38, %v279_v50  ;;  %v293_v15 = vrot.slane %v292_v20, 1 }
  0xae   :  { %v305_v42 = vadd.f32 %v304_v1, %v303_v23  ;;  %v341_v56 = vrot.slane %v340_v2, 4  ;;  %v317_v54 = vrot.slane %v316_v30, 2  ;;  %v351_v7 = vadd.f32 %v350_v27, %v2661_v12  ;;  %v2714_v27 = vld [vmem:[#allocation2 + $0x78] sm:$0xff] }
  0xaf   :  { %3631 = vst [vmem:[#allocation59_spill] sm:$0xff] %v2667_v25  ;;  %v1039_v3 = vsub.f32 %v905_v18, %v987_v49  ;;  %v329_v40 = vadd.f32 %v328_v55, %v327_v28  ;;  %v2670_v62 = vadd.f32 %v293_v15, %v292_v20  ;;  %v352_v53 = vsel %vm169_vm0, %v2664_v29, 0.0  ;;  %3641 = vst [vmem:[#allocation69_spill] sm:$0xff] %v2714_v27 }
  0xb0   :  { %v306_v58 = vrot.slane %v305_v42, 1  ;;  %v342_v8 = vadd.f32 %v341_v56, %v340_v2 }
  0xb1   :  { %3632 = vst [vmem:[#allocation60_spill] sm:$0xff] %v2670_v62  ;;  %v2675_v35 = vrot.slane %v1039_v3, %v3568_v24  ;;  %v2678_v50 = vrot.slane %v1039_v3, %v3569_v19  ;;  %v2681_v23 = vrot.slane %v1039_v3, %v3571_v32  ;;  %v2684_v13 = vrot.slane %v1039_v3, %v3572_v33 }
  0xb2   :  { %v2687_v16 = vrot.slane %v1039_v3, %v3573_v5  ;;  %v2690_v2 = vrot.slane %v1039_v3, %v3575_v43  ;;  %v2693_v28 = vrot.slane %v1039_v3, %v3576_v52  ;;  %v2696_v45 = vrot.slane %v1039_v3, %v3579_v34 }
  0xb3   :  { %3633 = vst [vmem:[#allocation61_spill] sm:$0xff] %v2675_v35  ;;  %3634 = vst [vmem:[#allocation62_spill] sm:$0xff] %v2678_v50  ;;  %v1299_v18 = vadd.f32 %v2675_v35, %v2563_v44  ;;  %v1300_v38 = vadd.f32 %v2678_v50, %v2574_v0  ;;  %v1301_v20 = vadd.f32 %v2681_v23, %v2582_v10  ;;  %v2716_v0 = vld [vmem:[#allocation2 + $0xf8] sm:$0xff] }
  0xb4   :  { %3635 = vst [vmem:[#allocation63_spill] sm:$0xff] %v2681_v23  ;;  %3636 = vst [vmem:[#allocation64_spill] sm:$0xff] %v2684_v13  ;;  %v1302_v1 = vadd.f32 %v2684_v13, %v2595_v41  ;;  %v1303_v49 = vadd.f32 %v2687_v16, %v2610_v57  ;;  %v1304_v55 = vadd.f32 %v2690_v2, %v2614_v47  ;;  %v2718_v13 = vld [vmem:[#allocation2 + $0x378] sm:$0x1] }
  0xb5   :  { %3637 = vst [vmem:[#allocation65_spill] sm:$0xff] %v2687_v16  ;;  %3638 = vst [vmem:[#allocation66_spill] sm:$0xff] %v2690_v2  ;;  %v1305_v3 = vadd.f32 %v2693_v28, %v2626_v61  ;;  %v1306_v44 = vadd.f32 %v2696_v45, %v2632_v14  ;;  %v1411_v10 = vmax.f32 %v1299_v18, 0.0  ;;  %v1412_v15 = vmax.f32 %v1300_v38, 0.0  ;;  %v2720_v61 = vld [vmem:[#allocation2 + $0x178] sm:$0xff] }
  0xb6   :  { %3639 = vst [vmem:[#allocation67_spill] sm:$0xff] %v2693_v28  ;;  %3640 = vst [vmem:[#allocation68_spill] sm:$0xff] %v2696_v45  ;;  %v1413_v56 = vmax.f32 %v1301_v20, 0.0  ;;  %v1414_v41 = vmax.f32 %v1302_v1, 0.0  ;;  %v1415_v57 = vmax.f32 %v1303_v49, 0.0  ;;  %v1416_v16 = vmax.f32 %v1304_v55, 0.0 }
  0xb7   :  { %3642 = vst [vmem:[#allocation70_spill] sm:$0xff] %v2716_v0  ;;  %v1417_v23 = vmax.f32 %v1305_v3, 0.0  ;;  %v1418_v47 = vmax.f32 %v1306_v44, 0.0  ;;  %1523 = vst [vmem:[#allocation8] sm:$0xff] %v1411_v10  ;;  %v2722_v14 = vadd.f32 %v306_v58, %v305_v42  ;;  %v318_v45 = vadd.f32 %v317_v54, %v316_v30  ;;  %v115_v42 = vld [vmem:[#allocation2 + $0x1f8] sm:$0xff] }
  0xb8   :  { %1524 = vst [vmem:[#allocation8 + $0x8] sm:$0xff] %v1412_v15  ;;  %1525 = vst [vmem:[#allocation8 + $0x10] sm:$0xff] %v1413_v56  ;;  %v330_v28 = vrot.slane %v329_v40, 2  ;;  %v343_v18 = vrot.slane %v342_v8, 2  ;;  %v353_v38 = vadd.f32 %v352_v53, %v351_v7  ;;  %v360_v20 = vadd.f32 %v2716_v0, %v2714_v27  ;;  %v3661_v35 = vld [vmem:[#allocation51_spill] sm:$0xff] }
  0xb9   :  { %1526 = vst [vmem:[#allocation8 + $0x18] sm:$0xff] %v1414_v41  ;;  %3643 = vst [vmem:[#allocation71_spill] sm:$0xff] %v2720_v61  ;;  %v365_v1 = vsel %vm169_vm0, %v2718_v13, 0.0  ;;  %v2730_v49 = vmul.f32 %v2376_v4, %v2376_v4  ;;  %v319_v58 = vrot.slane %v318_v45, 1  ;;  %v2739_v53 = vmul.f32 %v2384_v11, %v2384_v11  ;;  %v131_v4 = vld [vmem:[#allocation2 + $0x278] sm:$0xff] }
  0xba   :  { %3644 = vst [vmem:[#allocation72_spill] sm:$0xff] %v2722_v14  ;;  %1527 = vst [vmem:[#allocation8 + $0x20] sm:$0xff] %v1415_v57  ;;  %v331_v54 = vadd.f32 %v330_v28, %v329_v40  ;;  %v344_v30 = vadd.f32 %v343_v18, %v342_v8  ;;  %v361_v7 = vadd.f32 %v360_v20, %v2720_v61 }
  0xbb   :  { %1528 = vst [vmem:[#allocation8 + $0x28] sm:$0xff] %v1416_v16  ;;  %1529 = vst [vmem:[#allocation8 + $0x30] sm:$0xff] %v1417_v23  ;;  %v2734_v16 = vmul.f32 %v2382_v59, %v2382_v59  ;;  %v354_v23 = vrot.slane %v353_v38, 4  ;;  %v2743_v55 = vmul.f32 %v2388_v17, %v2388_v17  ;;  %v2745_v3 = vadd.f32 %v319_v58, %v318_v45  ;;  %v147_v17 = vld [vmem:[#allocation2 + $0x2f8] sm:$0xff] }
  0xbc   :  { %1530 = vst [vmem:[#allocation8 + $0x38] sm:$0xff] %v1418_v47  ;;  %v332_v40 = vrot.slane %v331_v54, 1  ;;  %v345_v8 = vrot.slane %v344_v30, 1  ;;  %v2749_v59 = vmul.f32 %v2410_v6, %v2410_v6  ;;  %v362_v44 = vadd.f32 %v361_v7, %v115_v42 }
  0xbd   :  { %3645 = vst [vmem:[#allocation73_spill] sm:$0xff] %v2745_v3  ;;  %v355_v28 = vadd.f32 %v354_v23, %v353_v38  ;;  %v2753_v10 = vmul.f32 %v2420_v9, %v2420_v9  ;;  %v2757_v11 = vmul.f32 %v2450_v48, %v2450_v48  ;;  %v2765_v56 = vmul.f32 %v2714_v27, %v2714_v27  ;;  %v3651_v23 = vld [vmem:[#allocation32_spill] sm:$0xff] }
  0xbe   :  { %v2759_v15 = vadd.f32 %v332_v40, %v331_v54  ;;  %v2761_v45 = vadd.f32 %v345_v8, %v344_v30  ;;  %v397_v6 = vmul.f32 %v2378_v39, %v2378_v39  ;;  %v363_v57 = vadd.f32 %v362_v44, %v131_v4  ;;  %v3649_v54 = vld [vmem:[#allocation43_spill] sm:$0xff]  ;;  %v3658_v27 = vld [vmem:[#allocation48_spill] sm:$0xff] }
  0xbf   :  { %v356_v41 = vrot.slane %v355_v28, 2  ;;  %v398_v9 = vmul.f32 %v2390_v31, %v2390_v31  ;;  %v399_v48 = vmul.f32 %v2400_v63, %v2400_v63  ;;  %v2775_v47 = vmul.f32 %v2402_v51, %v2402_v51  ;;  %v3648_v51 = vld [vmem:[#allocation30_spill] sm:$0xff]  ;;  %v3650_v30 = vld [vmem:[#allocation31_spill] sm:$0xff] }
  0xc0   :  { %3646 = vst [vmem:[#allocation74_spill] sm:$0xff] %v2759_v15  ;;  %3647 = vst [vmem:[#allocation75_spill] sm:$0xff] %v2761_v45  ;;  %v2779_v18 = vmul.f32 %v2412_v46, %v2412_v46  ;;  %v2783_v38 = vmul.f32 %v2422_v21, %v2422_v21  ;;  %v2787_v39 = vmul.f32 %v2452_v60, %v2452_v60 }
  0xc1   :  { %v357_v31 = vadd.f32 %v356_v41, %v355_v28  ;;  %v364_v20 = vadd.f32 %v363_v57, %v147_v17  ;;  %v2791_v63 = vmul.f32 %v2716_v0, %v2716_v0  ;;  %v413_v58 = vmul.f32 %v3648_v51, %v3648_v51  ;;  %v3652_v28 = vld [vmem:[#allocation47_spill] sm:$0xff]  ;;  %v3657_v0 = vld [vmem:[#allocation40_spill] sm:$0xff] }
  0xc2   :  { %v414_v46 = vmul.f32 %v3649_v54, %v3649_v54  ;;  %v415_v21 = vmul.f32 %v3650_v30, %v3650_v30  ;;  %v416_v7 = vmul.f32 %v3651_v23, %v3651_v23  ;;  %v2803_v60 = vmul.f32 %v2438_v36, %v2438_v36  ;;  %v3653_v51 = vld [vmem:[#allocation39_spill] sm:$0xff]  ;;  %v3654_v30 = vld [vmem:[#allocation44_spill] sm:$0xff]  ;;  %v3655_v23 = vld [vmem:[#allocation45_spill] sm:$0xff] }
  0xc3   :  { %v358_v40 = vrot.slane %v357_v31, 1  ;;  %v366_v8 = vadd.f32 %v365_v1, %v364_v20  ;;  %v2807_v44 = vmul.f32 %v3652_v28, %v3652_v28  ;;  %v2811_v41 = vmul.f32 %v2634_v26, %v2634_v26 }
  0xc4   :  { %v2815_v57 = vmul.f32 %v2720_v61, %v2720_v61  ;;  %v429_v54 = vmul.f32 %v3653_v51, %v3653_v51  ;;  %v430_v36 = vmul.f32 %v3654_v30, %v3654_v30  ;;  %v431_v1 = vmul.f32 %v3655_v23, %v3655_v23  ;;  %v3659_v61 = vld [vmem:[#allocation54_spill] sm:$0xff]  ;;  %v3662_v23 = vld [vmem:[#allocation52_spill] sm:$0xff] }
  0xc5   :  { %v2823_v20 = vadd.f32 %v358_v40, %v357_v31  ;;  %v367_v28 = vrot.slane %v366_v8, 4  ;;  %v432_v26 = vmul.f32 %v3657_v0, %v3657_v0  ;;  %v433_v2 = vmul.f32 %v3658_v27, %v3658_v27  ;;  %v3663_v0 = vld [vmem:[#allocation53_spill] sm:$0xff]  ;;  %v3664_v27 = vld [vmem:[#allocation34_spill] sm:$0xff] }
  0xc6   :  { %v434_v50 = vmul.f32 %v3659_v61, %v3659_v61  ;;  %v2833_v51 = vmul.f32 %v2647_v22, %v2647_v22  ;;  %v2835_v30 = vmul.f32 %v115_v42, %v115_v42  ;;  %v445_v31 = vmul.f32 %v3661_v35, %v3661_v35  ;;  %v3665_v61 = vld [vmem:[#allocation24_spill] sm:$0xff] }
  0xc7   :  { %3656 = vst [vmem:[#allocation30_spill] sm:$0xff] %v2823_v20  ;;  %v368_v40 = vadd.f32 %v367_v28, %v366_v8  ;;  %v446_v34 = vmul.f32 %v3662_v23, %v3662_v23  ;;  %v447_v52 = vmul.f32 %v3663_v0, %v3663_v0  ;;  %v448_v43 = vmul.f32 %v3664_v27, %v3664_v27  ;;  %v3666_v22 = vld [vmem:[#allocation28_spill] sm:$0xff]  ;;  %v3668_v28 = vld [vmem:[#allocation41_spill] sm:$0xff]  ;;  %v3670_v27 = vld [vmem:[#allocation35_spill] sm:$0xff] }
  0xc8   :  { %3660 = vst [vmem:[#allocation43_spill] sm:$0xff] %v2835_v30  ;;  %v449_v5 = vmul.f32 %v3665_v61, %v3665_v61  ;;  %v450_v42 = vmul.f32 %v3666_v22, %v3666_v22  ;;  %v2851_v33 = vmul.f32 %v2655_v37, %v2655_v37  ;;  %v2853_v35 = vmul.f32 %v131_v4, %v131_v4  ;;  %v3669_v0 = vld [vmem:[#allocation49_spill] sm:$0xff]  ;;  %v3671_v61 = vld [vmem:[#allocation56_spill] sm:$0xff]  ;;  %v3673_v37 = vld [vmem:[#allocation58_spill] sm:$0xff] }
  0xc9   :  { %v369_v8 = vrot.slane %v368_v40, 2  ;;  %v461_v23 = vmul.f32 %v3668_v28, %v3668_v28  ;;  %v462_v32 = vmul.f32 %v3669_v0, %v3669_v0  ;;  %v463_v19 = vmul.f32 %v3670_v27, %v3670_v27  ;;  %v3672_v22 = vld [vmem:[#allocation57_spill] sm:$0xff]  ;;  %v3677_v27 = vld [vmem:[#allocation36_spill] sm:$0xff] }
  0xca   :  { %3667 = vst [vmem:[#allocation31_spill] sm:$0xff] %v2853_v35  ;;  %v464_v24 = vmul.f32 %v3671_v61, %v3671_v61  ;;  %v465_v20 = vmul.f32 %v3672_v22, %v3672_v22  ;;  %v466_v4 = vmul.f32 %v3673_v37, %v3673_v37  ;;  %v2869_v45 = vmul.f32 %v2661_v12, %v2661_v12  ;;  %v3676_v0 = vld [vmem:[#allocation25_spill] sm:$0xff]  ;;  %v3679_v22 = vld [vmem:[#allocation38_spill] sm:$0xff] }
  0xcb   :  { %v370_v28 = vadd.f32 %v369_v8, %v368_v40  ;;  %v2871_v15 = vmul.f32 %v147_v17, %v147_v17  ;;  %v477_v3 = vmul.f32 %v3676_v0, %v3676_v0  ;;  %v478_v14 = vmul.f32 %v3677_v27, %v3677_v27  ;;  %v3678_v61 = vld [vmem:[#allocation37_spill] sm:$0xff]  ;;  %v3681_v12 = vld [vmem:[#allocation46_spill] sm:$0xff] }
  0xcc   :  { %3674 = vst [vmem:[#allocation32_spill] sm:$0xff] %v2869_v45  ;;  %v479_v62 = vmul.f32 %v3678_v61, %v3678_v61  ;;  %v480_v25 = vmul.f32 %v3679_v22, %v3679_v22  ;;  %v3680_v37 = vld [vmem:[#allocation33_spill] sm:$0xff]  ;;  %v482_v40 = vmul.f32 %v3681_v12, %v3681_v12  ;;  %v483_v8 = vmul.f32 %v2664_v29, %v2664_v29 }
  0xcd   :  { %3675 = vst [vmem:[#allocation47_spill] sm:$0xff] %v2871_v15  ;;  %v481_v35 = vmul.f32 %v3680_v37, %v3680_v37  ;;  %v371_v17 = vrot.slane %v370_v28, 1  ;;  %v2889_v0 = vmul.f32 %v2718_v13, %v2718_v13  ;;  %v589_v27 = vadd.f32 %v397_v6, %v2730_v49 }
  0xce   :  { %v594_v61 = vsel %vm169_vm0, %v477_v3, 0.0  ;;  %v602_v22 = vadd.f32 %v398_v9, %v2734_v16  ;;  %v607_v15 = vsel %vm169_vm0, %v478_v14, 0.0  ;;  %v615_v37 = vadd.f32 %v399_v48, %v2739_v53 }
  0xcf   :  { %3682 = vst [vmem:[#allocation39_spill] sm:$0xff] %v2889_v0  ;;  %v2896_v45 = vadd.f32 %v371_v17, %v370_v28  ;;  %v590_v12 = vadd.f32 %v589_v27, %v413_v58  ;;  %v620_v30 = vsel %vm169_vm0, %v479_v62, 0.0  ;;  %v628_v29 = vadd.f32 %v2775_v47, %v2743_v55 }
  0xd0   :  { %v603_v13 = vadd.f32 %v602_v22, %v414_v46  ;;  %v616_v0 = vadd.f32 %v615_v37, %v415_v21  ;;  %v633_v49 = vsel %vm169_vm0, %v480_v25, 0.0  ;;  %v641_v3 = vadd.f32 %v2779_v18, %v2749_v59 }
  0xd1   :  { %v591_v16 = vadd.f32 %v590_v12, %v429_v54  ;;  %v629_v6 = vadd.f32 %v628_v29, %v416_v7  ;;  %v646_v14 = vsel %vm169_vm0, %v481_v35, 0.0  ;;  %v654_v53 = vadd.f32 %v2783_v38, %v2753_v10 }
  0xd2   :  { %v604_v9 = vadd.f32 %v603_v13, %v430_v36  ;;  %v617_v48 = vadd.f32 %v616_v0, %v431_v1  ;;  %v642_v62 = vadd.f32 %v641_v3, %v2803_v60  ;;  %v659_v55 = vsel %vm169_vm0, %v482_v40, 0.0  ;;  %v3683_v40 = vld [vmem:[#allocation43_spill] sm:$0xff] }
  0xd3   :  { %v592_v47 = vadd.f32 %v591_v16, %v445_v31  ;;  %v630_v58 = vadd.f32 %v629_v6, %v432_v26  ;;  %v655_v25 = vadd.f32 %v654_v53, %v2807_v44  ;;  %v667_v59 = vadd.f32 %v2787_v39, %v2757_v11  ;;  %v3684_v17 = vld [vmem:[#allocation32_spill] sm:$0xff] }
  0xd4   :  { %v605_v18 = vadd.f32 %v604_v9, %v446_v34  ;;  %v618_v46 = vadd.f32 %v617_v48, %v447_v52  ;;  %v643_v21 = vadd.f32 %v642_v62, %v433_v2  ;;  %v672_v7 = vsel %vm169_vm0, %v483_v8, 0.0  ;;  %v3685_v8 = vld [vmem:[#allocation31_spill] sm:$0xff] }
  0xd5   :  { %v593_v54 = vadd.f32 %v592_v47, %v461_v23  ;;  %v631_v10 = vadd.f32 %v630_v58, %v448_v43  ;;  %v656_v38 = vadd.f32 %v655_v25, %v434_v50  ;;  %v668_v36 = vadd.f32 %v667_v59, %v2811_v41  ;;  %v3686_v12 = vld [vmem:[#allocation47_spill] sm:$0xff] }
  0xd6   :  { %v606_v60 = vadd.f32 %v605_v18, %v462_v32  ;;  %v619_v1 = vadd.f32 %v618_v46, %v463_v19  ;;  %v644_v35 = vadd.f32 %v643_v21, %v449_v5  ;;  %v680_v26 = vadd.f32 %v2791_v63, %v2765_v56  ;;  %v3687_v9 = vld [vmem:[#allocation39_spill] sm:$0xff] }
  0xd7   :  { %v595_v44 = vadd.f32 %v594_v61, %v593_v54  ;;  %v632_v31 = vadd.f32 %v631_v10, %v464_v24  ;;  %v657_v28 = vadd.f32 %v656_v38, %v450_v42  ;;  %v669_v34 = vadd.f32 %v668_v36, %v2833_v51 }
  0xd8   :  { %v608_v52 = vadd.f32 %v607_v15, %v606_v60  ;;  %v621_v2 = vadd.f32 %v620_v30, %v619_v1  ;;  %v645_v11 = vadd.f32 %v644_v35, %v465_v20  ;;  %v681_v39 = vadd.f32 %v680_v26, %v2815_v57 }
  0xd9   :  { %v596_v43 = vrot.slane %v595_v44, 4  ;;  %v634_v50 = vadd.f32 %v633_v49, %v632_v31  ;;  %v658_v23 = vadd.f32 %v657_v28, %v466_v4  ;;  %v670_v32 = vadd.f32 %v669_v34, %v2851_v33  ;;  %v3688_v31 = vld [vmem:[#allocation59_spill] sm:$0xff] }
  0xda   :  { %v609_v19 = vrot.slane %v608_v52, 4  ;;  %v622_v5 = vrot.slane %v621_v2, 4  ;;  %v647_v41 = vadd.f32 %v646_v14, %v645_v11  ;;  %v682_v56 = vadd.f32 %v681_v39, %v3683_v40  ;;  %v3690_v39 = vld [vmem:[#allocation72_spill] sm:$0xff] }
  0xdb   :  { %v597_v63 = vadd.f32 %v596_v43, %v595_v44  ;;  %v635_v24 = vrot.slane %v634_v50, 4  ;;  %v660_v42 = vadd.f32 %v659_v55, %v658_v23  ;;  %v671_v51 = vadd.f32 %v670_v32, %v3684_v17  ;;  %v3691_v32 = vld [vmem:[#allocation73_spill] sm:$0xff] }
  0xdc   :  { %v610_v15 = vadd.f32 %v609_v19, %v608_v52  ;;  %v623_v30 = vadd.f32 %v622_v5, %v621_v2  ;;  %v648_v20 = vrot.slane %v647_v41, 4  ;;  %v683_v57 = vadd.f32 %v682_v56, %v3685_v8  ;;  %v3689_v2 = vld [vmem:[#allocation60_spill] sm:$0xff]  ;;  %v3692_v5 = vld [vmem:[#allocation74_spill] sm:$0xff]  ;;  %v3693_v56 = vld [vmem:[#allocation75_spill] sm:$0xff] }
  0xdd   :  { %v598_v0 = vrot.slane %v597_v63, 2  ;;  %v636_v27 = vadd.f32 %v635_v24, %v634_v50  ;;  %v661_v4 = vrot.slane %v660_v42, 4  ;;  %v673_v61 = vadd.f32 %v672_v7, %v671_v51  ;;  %v3694_v24 = vld [vmem:[#allocation30_spill] sm:$0xff] }
  0xde   :  { %v611_v33 = vrot.slane %v610_v15, 2  ;;  %v624_v22 = vrot.slane %v623_v30, 2  ;;  %v649_v37 = vadd.f32 %v648_v20, %v647_v41  ;;  %v684_v29 = vadd.f32 %v683_v57, %v3686_v12 }
  0xdf   :  { %v599_v13 = vadd.f32 %v598_v0, %v597_v63  ;;  %v637_v49 = vrot.slane %v636_v27, 2  ;;  %v662_v3 = vadd.f32 %v661_v4, %v660_v42  ;;  %v674_v16 = vrot.slane %v673_v61, 4 }
  0xe0   :  { %v612_v6 = vadd.f32 %v611_v33, %v610_v15  ;;  %v625_v14 = vadd.f32 %v624_v22, %v623_v30  ;;  %v650_v53 = vrot.slane %v649_v37, 2  ;;  %v685_v48 = vsel %vm169_vm0, %v3687_v9, 0.0 }
  0xe1   :  { %v600_v62 = vrot.slane %v599_v13, 1  ;;  %v638_v55 = vadd.f32 %v637_v49, %v636_v27  ;;  %v663_v47 = vrot.slane %v662_v3, 2  ;;  %v675_v58 = vadd.f32 %v674_v16, %v673_v61 }
  0xe2   :  { %v613_v25 = vrot.slane %v612_v6, 1  ;;  %v626_v59 = vrot.slane %v625_v14, 1  ;;  %v651_v18 = vadd.f32 %v650_v53, %v649_v37  ;;  %v686_v46 = vadd.f32 %v685_v48, %v684_v29 }
  0xe3   :  { %v601_v21 = vadd.f32 %v600_v62, %v599_v13  ;;  %v639_v7 = vrot.slane %v638_v55, 1  ;;  %v664_v54 = vadd.f32 %v663_v47, %v662_v3  ;;  %v676_v10 = vrot.slane %v675_v58, 2 }
  0xe4   :  { %v614_v38 = vadd.f32 %v613_v25, %v612_v6  ;;  %v627_v36 = vadd.f32 %v626_v59, %v625_v14  ;;  %v652_v60 = vrot.slane %v651_v18, 1  ;;  %v687_v1 = vrot.slane %v686_v46, 4 }
  0xe5   :  { %v640_v35 = vadd.f32 %v639_v7, %v638_v55  ;;  %v665_v26 = vrot.slane %v664_v54, 1  ;;  %v677_v44 = vadd.f32 %v676_v10, %v675_v58  ;;  %v2926_v28 = vmul.f32 0.020408163, %v3688_v31 }
  0xe6   :  { %v653_v34 = vadd.f32 %v652_v60, %v651_v18  ;;  %v688_v52 = vadd.f32 %v687_v1, %v686_v46  ;;  %v2929_v11 = vmul.f32 0.020408163, %v3689_v2  ;;  %v2932_v43 = vmul.f32 0.020408163, %v3690_v39  ;;  %v2965_v46 = vld [vmem:[#allocation5 + $0x8] sm:$0xff]  ;;  %v3697_v39 = vld [vmem:[#allocation14_spill] sm:$0xff] }
  0xe7   :  { %v666_v50 = vadd.f32 %v665_v26, %v664_v54  ;;  %v678_v23 = vrot.slane %v677_v44, 1  ;;  %v2935_v19 = vmul.f32 0.020408163, %v3691_v32  ;;  %v2938_v41 = vmul.f32 0.020408163, %v3692_v5  ;;  %v3699_v5 = vld [vmem:[#allocation19_spill] sm:$0xff] }
  0xe8   :  { %v689_v40 = vrot.slane %v688_v52, 2  ;;  %v2941_v63 = vmul.f32 0.020408163, %v3693_v56  ;;  %v2944_v42 = vmul.f32 0.020408163, %v3694_v24  ;;  %v733_v17 = vmul.f32 %v2926_v28, %v2926_v28  ;;  %v3700_v56 = vld [vmem:[#allocation20_spill] sm:$0xff] }
  0xe9   :  { %v679_v51 = vadd.f32 %v678_v23, %v677_v44  ;;  %v2949_v15 = vmul.f32 0.020408163, %v2896_v45  ;;  %v717_v30 = vmul.f32 0.020408163, %v601_v21  ;;  %v718_v20 = vmul.f32 0.020408163, %v614_v38 }
  0xea   :  { %v690_v8 = vadd.f32 %v689_v40, %v688_v52  ;;  %v719_v57 = vmul.f32 0.020408163, %v627_v36  ;;  %v720_v0 = vmul.f32 0.020408163, %v640_v35  ;;  %v721_v27 = vmul.f32 0.020408163, %v653_v34 }
  0xeb   :  { %v722_v4 = vmul.f32 0.020408163, %v666_v50  ;;  %v723_v61 = vmul.f32 0.020408163, %v679_v51  ;;  %v734_v33 = vmul.f32 %v2929_v11, %v2929_v11  ;;  %v735_v22 = vmul.f32 %v2932_v43, %v2932_v43  ;;  %v3695_v44 = vld [vmem:[#allocation12_spill] sm:$0xff]  ;;  %v3696_v52 = vld [vmem:[#allocation13_spill] sm:$0xff] }
  0xec   :  { %v691_v37 = vrot.slane %v690_v8, 1  ;;  %v736_v12 = vmul.f32 %v2935_v19, %v2935_v19  ;;  %v737_v45 = vmul.f32 %v2938_v41, %v2938_v41  ;;  %v738_v29 = vmul.f32 %v2941_v63, %v2941_v63  ;;  %v3698_v23 = vld [vmem:[#allocation15_spill] sm:$0xff]  ;;  %v3701_v51 = vld [vmem:[#allocation21_spill] sm:$0xff] }
  0xed   :  { %v739_v13 = vmul.f32 %v2944_v42, %v2944_v42  ;;  %v740_v49 = vmul.f32 %v2949_v15, %v2949_v15  ;;  %v749_v3 = vsub.f32 %v717_v30, %v733_v17  ;;  %v750_v16 = vsub.f32 %v718_v20, %v734_v33  ;;  %v3702_v20 = vld [vmem:[#allocation26_spill] sm:$0xff] }
  0xee   :  { %v692_v6 = vadd.f32 %v691_v37, %v690_v8  ;;  %v751_v14 = vsub.f32 %v719_v57, %v735_v22  ;;  %v752_v53 = vsub.f32 %v720_v0, %v736_v12  ;;  %v753_v9 = vsub.f32 %v721_v27, %v737_v45  ;;  %v1692_v57 = vld [vmem:[#allocation2 + $0x80] sm:$0xff]  ;;  %v3703_v0 = vld [vmem:[#allocation42_spill] sm:$0xff]  ;;  %v1695_v45 = vld [vmem:[#allocation2 + $0x98] sm:$0xff] }
  0xef   :  { %v754_v48 = vsub.f32 %v722_v4, %v738_v29  ;;  %v755_v62 = vsub.f32 %v723_v61, %v739_v13  ;;  %v765_v55 = vmax.f32 %v749_v3, 0.0  ;;  %v766_v47 = vmax.f32 %v750_v16, 0.0  ;;  %v1693_v4 = vld [vmem:[#allocation2 + $0x88] sm:$0xff]  ;;  %v3704_v61 = vld [vmem:[#allocation50_spill] sm:$0xff]  ;;  %v3705_v37 = vld [vmem:[#allocation16_spill] sm:$0xff] }
  0xf0   :  { %v724_v58 = vmul.f32 0.020408163, %v692_v6  ;;  %v767_v25 = vmax.f32 %v751_v14, 0.0  ;;  %v768_v59 = vmax.f32 %v752_v53, 0.0  ;;  %v769_v18 = vmax.f32 %v753_v9, 0.0  ;;  %v1694_v22 = vld [vmem:[#allocation2 + $0x90] sm:$0xff] }
  0xf1   :  { %v770_v21 = vmax.f32 %v754_v48, 0.0  ;;  %v771_v7 = vmax.f32 %v755_v62, 0.0  ;;  %v781_v54 = vadd.f32 1e-05, %v765_v55  ;;  %v782_v10 = vadd.f32 1e-05, %v766_v47 }
  0xf2   :  { %v756_v38 = vsub.f32 %v724_v58, %v740_v49  ;;  %v783_v36 = vadd.f32 1e-05, %v767_v25  ;;  %v784_v60 = vadd.f32 1e-05, %v768_v59  ;;  %v785_v1 = vadd.f32 1e-05, %v769_v18 }
  0xf3   :  { %v786_v35 = vadd.f32 1e-05, %v770_v21  ;;  %v787_v26 = vadd.f32 1e-05, %v771_v7  ;;  %1676 = vrsqrt.f32 %v781_v54  ;;  %v844_v31 = vrot.slane %v2965_v46, %v3695_v44  ;;  %v3706_v29 = vld [vmem:[#allocation17_spill] sm:$0xff]  ;;  %v1696_v49 = vld [vmem:[#allocation2 + $0xa0] sm:$0xff] }
  0xf4   :  { %v772_v34 = vmax.f32 %v756_v38, 0.0  ;;  %1678 = vrsqrt.f32 %v782_v10  ;;  %v848_v2 = vrot.slane %v2965_v46, %v3696_v52  ;;  %v852_v50 = vrot.slane %v2965_v46, %v3697_v39  ;;  %v3707_v3 = vld [vmem:[#allocation18_spill] sm:$0xff]  ;;  %v1697_v6 = vld [vmem:[#allocation2 + $0xa8] sm:$0xff]  ;;  %v3711_v47 = vld [vmem:[#allocation63_spill] sm:$0xff] }
  0xf5   :  { %1680 = vrsqrt.f32 %v783_v36  ;;  %v856_v32 = vrot.slane %v2965_v46, %v3698_v23  ;;  %v860_v40 = vrot.slane %v2965_v46, %v3699_v5  ;;  %v864_v24 = vrot.slane %v2965_v46, %v3700_v56  ;;  %v3708_v14 = vld [vmem:[#allocation22_spill] sm:$0xff]  ;;  %v3709_v9 = vld [vmem:[#allocation61_spill] sm:$0xff]  ;;  %v3712_v25 = vld [vmem:[#allocation64_spill] sm:$0xff] }
  0xf6   :  { %v788_v17 = vadd.f32 1e-05, %v772_v34  ;;  %1682 = vrsqrt.f32 %v784_v60  ;;  %v868_v30 = vrot.slane %v2965_v46, %v3701_v51  ;;  %v872_v8 = vrot.slane %v2965_v46, %v3702_v20  ;;  %v3710_v62 = vld [vmem:[#allocation62_spill] sm:$0xff]  ;;  %v3713_v18 = vld [vmem:[#allocation65_spill] sm:$0xff] }
  0xf7   :  { %1684 = vrsqrt.f32 %v785_v1  ;;  %v1121_v27 = vmul.f32 %v1692_v57, %v3703_v0  ;;  %v1122_v33 = vmul.f32 %v1693_v4, %v3704_v61  ;;  %v1123_v12 = vmul.f32 %v1694_v22, %v3705_v37  ;;  %v3714_v7 = vld [vmem:[#allocation66_spill] sm:$0xff]  ;;  %v3715_v1 = vld [vmem:[#allocation55_spill] sm:$0xff] }
  0xf8   :  { %1686 = vrsqrt.f32 %v786_v35  ;;  %v1124_v13 = vmul.f32 %v1695_v45, %v3706_v29  ;;  %v1125_v16 = vmul.f32 %v1696_v49, %v3707_v3  ;;  %v1126_v53 = vmul.f32 %v1697_v6, %v3708_v14  ;;  %v1698_v60 = vld [vmem:[#allocation2 + $0xb0] sm:$0xff]  ;;  %v3716_v4 = vld [vmem:[#allocation23_spill] sm:$0xff]  ;;  %v1700_v45 = vld [vmem:[#allocation2 + $0x100] sm:$0xff] }
  0xf9   :  { %1688 = vrsqrt.f32 %v787_v26  ;;  %v1315_v48 = vadd.f32 %v3709_v9, %v1121_v27  ;;  %v1316_v55 = vadd.f32 %v3710_v62, %v1122_v33  ;;  %v1317_v58 = vadd.f32 %v3711_v47, %v1123_v12  ;;  %v1699_v27 = vld [vmem:[#allocation2 + $0xb8] sm:$0xff]  ;;  %v1701_v49 = vld [vmem:[#allocation2 + $0x108] sm:$0xff]  ;;  %v1702_v6 = vld [vmem:[#allocation2 + $0x110] sm:$0xff] }
  0xfa   :  { %1690 = vrsqrt.f32 %v788_v17  ;;  %v1318_v59 = vadd.f32 %v3712_v25, %v1124_v13  ;;  %v1319_v21 = vadd.f32 %v3713_v18, %v1125_v16  ;;  %v1320_v54 = vadd.f32 %v3714_v7, %v1126_v53  ;;  %v3717_v17 = vld [vmem:[#allocation67_spill] sm:$0xff] }
  0xfb   :  { %v1427_v10 = vmax.f32 %v1315_v48, 0.0  ;;  %v1428_v38 = vmax.f32 %v1316_v55, 0.0  ;;  %v1429_v36 = vmax.f32 %v1317_v58, 0.0  ;;  %v1127_v35 = vmul.f32 %v1698_v60, %v3715_v1  ;;  %v3718_v58 = vld [vmem:[#allocation68_spill] sm:$0xff] }
  0xfc   :  { %v1430_v26 = vmax.f32 %v1318_v59, 0.0  ;;  %v1431_v34 = vmax.f32 %v1319_v21, 0.0  ;;  %v1432_v57 = vmax.f32 %v1320_v54, 0.0  ;;  %v1128_v33 = vmul.f32 %v1699_v27, %v3716_v4  ;;  %v1703_v21 = vld [vmem:[#allocation2 + $0x118] sm:$0xff] }
  0xfd   :  { %v1677_v22 = vpop.eup %1676  ;;  %1539 = vst [vmem:[#allocation8 + $0x80] sm:$0xff] %v1427_v10  ;;  %1540 = vst [vmem:[#allocation8 + $0x88] sm:$0xff] %v1428_v38  ;;  %v1321_v12 = vadd.f32 %v3717_v17, %v1127_v35  ;;  %v1137_v13 = vmul.f32 %v1700_v45, %v3703_v0  ;;  %v1138_v16 = vmul.f32 %v1701_v49, %v3704_v61  ;;  %v1704_v10 = vld [vmem:[#allocation2 + $0x120] sm:$0xff] }
  0xfe   :  { %1541 = vst [vmem:[#allocation8 + $0x90] sm:$0xff] %v1429_v36  ;;  %v3001_v53 = vmul.f32 %v1702_v6, %v3705_v37  ;;  %v1679_v48 = vpop.eup %1678  ;;  %v897_v55 = vmul.f32 %v1677_v22, %v844_v31  ;;  %1542 = vst [vmem:[#allocation8 + $0x98] sm:$0xff] %v1430_v26  ;;  %v1322_v59 = vadd.f32 %v3718_v58, %v1128_v33  ;;  %v1705_v6 = vld [vmem:[#allocation2 + $0x40] sm:$0xff] }
  0xff   :  { %1543 = vst [vmem:[#allocation8 + $0xa0] sm:$0xff] %v1431_v34  ;;  %1544 = vst [vmem:[#allocation8 + $0xa8] sm:$0xff] %v1432_v57  ;;  %v3005_v54 = vmul.f32 %v1703_v21, %v3706_v29  ;;  %v3008_v38 = vmul.f32 %v1704_v10, %v3707_v3  ;;  %v1681_v36 = vpop.eup %1680  ;;  %v898_v60 = vmul.f32 %v1679_v48, %v848_v2  ;;  %v1433_v35 = vmax.f32 %v1321_v12, 0.0  ;;  %v1706_v10 = vld [vmem:[#allocation2 + $0x48] sm:$0xff] }
 0x100   :  { %v1331_v31 = vadd.f32 %v3709_v9, %v1137_v13  ;;  %v3015_v26 = vadd.f32 %v3710_v62, %v1138_v16  ;;  %v1683_v34 = vpop.eup %1682  ;;  %v899_v57 = vmul.f32 %v1681_v36, %v852_v50  ;;  %v915_v27 = vmul.f32 %v897_v55, %v2926_v28  ;;  %v1720_v9 = vld [vmem:[#allocation2 + $0x130] sm:$0xff] }
 0x101   :  { %v3022_v33 = vrot.slane %v897_v55, %v3695_v44  ;;  %v1434_v22 = vmax.f32 %v1322_v59, 0.0  ;;  %v1685_v45 = vpop.eup %1684  ;;  %v900_v2 = vmul.f32 %v1683_v34, %v856_v32  ;;  %v916_v12 = vmul.f32 %v898_v60, %v2929_v11  ;;  %1545 = vst [vmem:[#allocation8 + $0xb0] sm:$0xff] %v1433_v35  ;;  %v1707_v35 = vld [vmem:[#allocation2 + $0x50] sm:$0xff] }
 0x102   :  { %v3029_v13 = vrot.slane %v898_v60, %v3695_v44  ;;  %v1443_v49 = vmax.f32 %v1331_v31, 0.0  ;;  %v1687_v16 = vpop.eup %1686  ;;  %v901_v28 = vmul.f32 %v1685_v45, %v860_v40  ;;  %v917_v50 = vmul.f32 %v899_v57, %v2932_v43  ;;  %v1708_v45 = vld [vmem:[#allocation2 + $0x58] sm:$0xff] }
 0x103   :  { %3719 = vst [vmem:[#allocation44_spill] sm:$0xff] %v3022_v33  ;;  %v3036_v48 = vmul.f32 %v1705_v6, %v3022_v33  ;;  %v3039_v32 = vrot.slane %v899_v57, %v3695_v44  ;;  %1546 = vst [vmem:[#allocation8 + $0xb8] sm:$0xff] %v1434_v22  ;;  %v1689_v11 = vpop.eup %1688  ;;  %v902_v55 = vmul.f32 %v1687_v16, %v864_v24  ;;  %v1709_v16 = vld [vmem:[#allocation2 + $0x60] sm:$0xff] }
 0x104   :  { %v918_v59 = vmul.f32 %v900_v2, %v2935_v19  ;;  %v988_v21 = vcombine.low %v915_v27, %v916_v12  ;;  %v3046_v40 = vmul.f32 %v1706_v10, %v3029_v13  ;;  %1555 = vst [vmem:[#allocation8 + $0x100] sm:$0xff] %v1443_v49  ;;  %v1691_v43 = vpop.eup %1690  ;;  %v903_v36 = vmul.f32 %v1689_v11, %v868_v30  ;;  %v3720_v27 = vld [vmem:[#allocation27_spill] sm:$0xff]  ;;  %v1711_v11 = vld [vmem:[#allocation2 + $0xc0] sm:$0xff]  ;;  %v1712_v10 = vld [vmem:[#allocation2 + $0x70] sm:$0xff] }
 0x105   :  { %v919_v60 = vmul.f32 %v901_v28, %v2938_v41  ;;  %v3053_v31 = vmul.f32 %v1707_v35, %v3039_v32  ;;  %v3056_v24 = vrot.slane %v900_v2, %v3695_v44  ;;  %v904_v19 = vmul.f32 %v1691_v43, %v872_v8  ;;  %v1713_v35 = vld [vmem:[#allocation2 + $0xc8] sm:$0xff] }
 0x106   :  { %v920_v34 = vmul.f32 %v902_v55, %v2941_v63  ;;  %v989_v57 = vcombine.low %v917_v50, %v918_v59  ;;  %v998_v22 = vrot.slane %v988_v21, %v3720_v27  ;;  %v921_v30 = vmul.f32 %v903_v36, %v2944_v42  ;;  %v1710_v50 = vld [vmem:[#allocation2 + $0x68] sm:$0xff] }
 0x107   :  { %v3065_v41 = vmul.f32 %v1708_v45, %v3056_v24  ;;  %v3068_v12 = vrot.slane %v901_v28, %v3695_v44  ;;  %v3071_v2 = vrot.slane %v902_v55, %v3695_v44  ;;  %v922_v46 = vmul.f32 %v904_v19, %v2949_v15 }
 0x108   :  { %v990_v8 = vcombine.low %v919_v60, %v920_v34  ;;  %v1005_v63 = vrot.slane %v989_v57, %v3720_v27  ;;  %v3076_v49 = vrot.slane %v903_v36, %v3695_v44  ;;  %v3085_v28 = vrot.slane %v904_v19, %v3695_v44  ;;  %v3721_v36 = vld [vmem:[#allocation69_spill] sm:$0xff]  ;;  %v1714_v34 = vld [vmem:[#allocation2 + $0xd0] sm:$0xff] }
 0x109   :  { %v3079_v42 = vmul.f32 %v1709_v16, %v3068_v12  ;;  %v3082_v6 = vmul.f32 %v1710_v50, %v3071_v2  ;;  %v3088_v15 = vmul.f32 %v1711_v11, %v3022_v33  ;;  %v991_v55 = vcombine.low %v921_v30, %v922_v46  ;;  %v1715_v30 = vld [vmem:[#allocation2 + $0xd8] sm:$0xff]  ;;  %v1717_v16 = vld [vmem:[#allocation2 + $0xe8] sm:$0xff]  ;;  %v1718_v11 = vld [vmem:[#allocation2 + $0xf0] sm:$0xff] }
 0x10a   :  { %v1012_v59 = vrot.slane %v990_v8, %v3720_v27  ;;  %v1020_v21 = vcombine.low %v998_v22, %v1005_v63  ;;  %v3092_v43 = vmul.f32 %v1712_v10, %v3076_v49  ;;  %v3096_v60 = vmul.f32 %v3085_v28, %v3721_v36  ;;  %v1716_v8 = vld [vmem:[#allocation2 + $0xe0] sm:$0xff]  ;;  %v3723_v36 = vld [vmem:[#allocation70_spill] sm:$0xff] }
 0x10b   :  { %v3099_v19 = vmul.f32 %v1713_v35, %v3029_v13  ;;  %v3102_v57 = vmul.f32 %v1714_v34, %v3039_v32  ;;  %v3105_v45 = vmul.f32 %v1715_v30, %v3056_v24  ;;  %v1019_v22 = vrot.slane %v991_v55, %v3720_v27 }
 0x10c   :  { %v1028_v46 = vrot.slane %v1020_v21, %v3720_v27  ;;  %v3110_v63 = vmul.f32 %v1716_v8, %v3068_v12  ;;  %v3113_v50 = vmul.f32 %v1717_v16, %v3071_v2  ;;  %v3116_v10 = vmul.f32 %v1718_v11, %v3076_v49  ;;  %v1719_v16 = vld [vmem:[#allocation2 + $0x128] sm:$0xff] }
 0x10d   :  { %v3120_v35 = vmul.f32 %v3085_v28, %v3723_v36  ;;  %v1444_v55 = vmax.f32 %v3015_v26, 0.0  ;;  %v1333_v21 = vadd.f32 %v3711_v47, %v3001_v53  ;;  %v1021_v34 = vcombine.low %v1012_v59, %v1019_v22 }
 0x10e   :  { %3722 = vst [vmem:[#allocation45_spill] sm:$0xff] %v3116_v10  ;;  %v1334_v30 = vadd.f32 %v3712_v25, %v3005_v54  ;;  %v1335_v8 = vadd.f32 %v3713_v18, %v3008_v38  ;;  %v1142_v11 = vmul.f32 %v1719_v16, %v3708_v14  ;;  %v1143_v36 = vmul.f32 %v1720_v9, %v3715_v1  ;;  %v1722_v10 = vld [vmem:[#allocation2 + $0x140] sm:$0xff]  ;;  %v906_v18 = vld [vmem:[#allocation7 + $0x8] sm:$0xff]  ;;  %v1723_v9 = vld [vmem:[#allocation2 + $0x148] sm:$0xff] }
 0x10f   :  { %3724 = vst [vmem:[#allocation40_spill] sm:$0xff] %v3120_v35  ;;  %1556 = vst [vmem:[#allocation8 + $0x108] sm:$0xff] %v1444_v55  ;;  %v1445_v62 = vmax.f32 %v1333_v21, 0.0  ;;  %v1721_v35 = vld [vmem:[#allocation2 + $0x138] sm:$0xff]  ;;  %v3133_v53 = vmul.f32 %v1722_v10, %v3022_v33  ;;  %v1035_v54 = vrot.slane %v1021_v34, %v3720_v27  ;;  %v3140_v16 = vmul.f32 %v1723_v9, %v3029_v13 }
 0x110   :  { %v1144_v26 = vmul.f32 %v1721_v35, %v3716_v4  ;;  %v1446_v59 = vmax.f32 %v1334_v30, 0.0  ;;  %v1447_v22 = vmax.f32 %v1335_v8, 0.0  ;;  %v1336_v38 = vadd.f32 %v3714_v7, %v1142_v11  ;;  %v1724_v35 = vld [vmem:[#allocation2 + $0x150] sm:$0xff]  ;;  %v1725_v34 = vld [vmem:[#allocation2 + $0x158] sm:$0xff] }
 0x111   :  { %1557 = vst [vmem:[#allocation8 + $0x110] sm:$0xff] %v1445_v62  ;;  %v1337_v55 = vadd.f32 %v3717_v17, %v1143_v36  ;;  %v3143_v10 = vmul.f32 %v1724_v35, %v3039_v32  ;;  %v1036_v33 = vcombine.low %v1028_v46, %v1035_v54  ;;  %v3146_v30 = vmul.f32 %v1725_v34, %v3056_v24  ;;  %v1726_v62 = vld [vmem:[#allocation2 + $0x160] sm:$0xff]  ;;  %v3725_v35 = vld [vmem:[#allocation29_spill] sm:$0xff] }
 0x112   :  { %v1338_v21 = vadd.f32 %v3718_v58, %v1144_v26  ;;  %1558 = vst [vmem:[#allocation8 + $0x118] sm:$0xff] %v1446_v59  ;;  %1559 = vst [vmem:[#allocation8 + $0x120] sm:$0xff] %v1447_v22  ;;  %v1448_v27 = vmax.f32 %v1336_v38, 0.0  ;;  %v3149_v8 = vmul.f32 %v1726_v62, %v3068_v12  ;;  %v1727_v26 = vld [vmem:[#allocation2 + $0x168] sm:$0xff]  ;;  %v3156_v46 = vmul.f32 %v3076_v49, %v3725_v35  ;;  %v3726_v59 = vld [vmem:[#allocation71_spill] sm:$0xff] }
 0x113   :  { %v1449_v11 = vmax.f32 %v1337_v55, 0.0  ;;  %v3152_v9 = vmul.f32 %v1727_v26, %v3071_v2  ;;  %v1040_v54 = vsub.f32 %v906_v18, %v1036_v33  ;;  %v3160_v22 = vmul.f32 %v3085_v28, %v3726_v59  ;;  %v1728_v38 = vld [vmem:[#allocation2 + $0x180] sm:$0xff]  ;;  %v1729_v55 = vld [vmem:[#allocation2 + $0x188] sm:$0xff]  ;;  %v1730_v62 = vld [vmem:[#allocation2 + $0x190] sm:$0xff] }
 0x114   :  { %v1450_v36 = vmax.f32 %v1338_v21, 0.0  ;;  %1560 = vst [vmem:[#allocation8 + $0x128] sm:$0xff] %v1448_v27  ;;  %v3163_v34 = vmul.f32 %v1728_v38, %v3703_v0  ;;  %v3166_v21 = vmul.f32 %v1729_v55, %v3704_v61  ;;  %v3169_v26 = vmul.f32 %v1730_v62, %v3705_v37  ;;  %v1731_v18 = vld [vmem:[#allocation2 + $0x198] sm:$0xff]  ;;  %v1732_v27 = vld [vmem:[#allocation2 + $0x1a0] sm:$0xff]  ;;  %v1733_v59 = vld [vmem:[#allocation2 + $0x1a8] sm:$0xff] }
 0x115   :  { %1561 = vst [vmem:[#allocation8 + $0x130] sm:$0xff] %v1449_v11  ;;  %v3172_v33 = vmul.f32 %v1731_v18, %v3706_v29  ;;  %v3175_v35 = vmul.f32 %v1732_v27, %v3707_v3  ;;  %v3178_v38 = vmul.f32 %v1733_v59, %v3708_v14  ;;  %v3181_v55 = vrot.slane %v1040_v54, %v3695_v44 }
 0x116   :  { %1562 = vst [vmem:[#allocation8 + $0x138] sm:$0xff] %v1450_v36  ;;  %v3184_v11 = vrot.slane %v1040_v54, %v3696_v52  ;;  %v3187_v36 = vrot.slane %v1040_v54, %v3697_v39  ;;  %v3190_v62 = vrot.slane %v1040_v54, %v3698_v23  ;;  %v3193_v18 = vrot.slane %v1040_v54, %v3699_v5 }
 0x117   :  { %v3196_v27 = vrot.slane %v1040_v54, %v3700_v56  ;;  %v3199_v59 = vrot.slane %v1040_v54, %v3701_v51  ;;  %v3202_v44 = vrot.slane %v1040_v54, %v3702_v20  ;;  %v1307_v52 = vadd.f32 %v3181_v55, %v3036_v48 }
 0x118   :  { %v1308_v39 = vadd.f32 %v3184_v11, %v3046_v40  ;;  %v1309_v23 = vadd.f32 %v3187_v36, %v3053_v31  ;;  %v1310_v5 = vadd.f32 %v3190_v62, %v3065_v41  ;;  %v1311_v56 = vadd.f32 %v3193_v18, %v3079_v42 }
 0x119   :  { %v1312_v51 = vadd.f32 %v3196_v27, %v3082_v6  ;;  %v1313_v20 = vadd.f32 %v3199_v59, %v3092_v43  ;;  %v1314_v48 = vadd.f32 %v3202_v44, %v3096_v60  ;;  %v1419_v54 = vmax.f32 %v1307_v52, 0.0 }
 0x11a   :  { %v1420_v40 = vmax.f32 %v1308_v39, 0.0  ;;  %v1421_v14 = vmax.f32 %v1309_v23, 0.0  ;;  %v1422_v3 = vmax.f32 %v1310_v5, 0.0  ;;  %v1423_v31 = vmax.f32 %v1311_v56, 0.0 }
 0x11b   :  { %v1424_v29 = vmax.f32 %v1312_v51, 0.0  ;;  %v1425_v37 = vmax.f32 %v1313_v20, 0.0  ;;  %v1426_v41 = vmax.f32 %v1314_v48, 0.0  ;;  %1531 = vst [vmem:[#allocation8 + $0x40] sm:$0xff] %v1419_v54  ;;  %v1323_v42 = vadd.f32 %v3181_v55, %v3088_v15  ;;  %v3727_v15 = vld [vmem:[#allocation45_spill] sm:$0xff] }
 0x11c   :  { %1532 = vst [vmem:[#allocation8 + $0x48] sm:$0xff] %v1420_v40  ;;  %1533 = vst [vmem:[#allocation8 + $0x50] sm:$0xff] %v1421_v14  ;;  %v1324_v6 = vadd.f32 %v3184_v11, %v3099_v19  ;;  %v1325_v43 = vadd.f32 %v3187_v36, %v3102_v57  ;;  %v1326_v60 = vadd.f32 %v3190_v62, %v3105_v45  ;;  %v3728_v19 = vld [vmem:[#allocation40_spill] sm:$0xff] }
 0x11d   :  { %1534 = vst [vmem:[#allocation8 + $0x58] sm:$0xff] %v1422_v3  ;;  %1535 = vst [vmem:[#allocation8 + $0x60] sm:$0xff] %v1423_v31  ;;  %v1327_v14 = vadd.f32 %v3193_v18, %v3110_v63  ;;  %v1328_v3 = vadd.f32 %v3196_v27, %v3113_v50  ;;  %v1329_v52 = vadd.f32 %v3199_v59, %v3727_v15  ;;  %v1435_v57 = vmax.f32 %v1323_v42, 0.0  ;;  %v3731_v15 = vld [vmem:[#allocation65_spill] sm:$0xff] }
 0x11e   :  { %1536 = vst [vmem:[#allocation8 + $0x68] sm:$0xff] %v1424_v29  ;;  %1537 = vst [vmem:[#allocation8 + $0x70] sm:$0xff] %v1425_v37  ;;  %v1330_v39 = vadd.f32 %v3202_v44, %v3728_v19  ;;  %v1436_v23 = vmax.f32 %v1324_v6, 0.0  ;;  %v1437_v5 = vmax.f32 %v1325_v43, 0.0  ;;  %v1438_v45 = vmax.f32 %v1326_v60, 0.0 }
 0x11f   :  { %1538 = vst [vmem:[#allocation8 + $0x78] sm:$0xff] %v1426_v41  ;;  %v1439_v56 = vmax.f32 %v1327_v14, 0.0  ;;  %v1440_v29 = vmax.f32 %v1328_v3, 0.0  ;;  %v1441_v37 = vmax.f32 %v1329_v52, 0.0  ;;  %1547 = vst [vmem:[#allocation8 + $0xc0] sm:$0xff] %v1435_v57  ;;  %v1339_v63 = vadd.f32 %v3181_v55, %v3133_v53 }
 0x120   :  { %v1442_v51 = vmax.f32 %v1330_v39, 0.0  ;;  %1548 = vst [vmem:[#allocation8 + $0xc8] sm:$0xff] %v1436_v23  ;;  %1549 = vst [vmem:[#allocation8 + $0xd0] sm:$0xff] %v1437_v5  ;;  %v1340_v50 = vadd.f32 %v3184_v11, %v3140_v16  ;;  %v1341_v20 = vadd.f32 %v3187_v36, %v3143_v10  ;;  %v1342_v48 = vadd.f32 %v3190_v62, %v3146_v30 }
 0x121   :  { %1550 = vst [vmem:[#allocation8 + $0xd8] sm:$0xff] %v1438_v45  ;;  %1551 = vst [vmem:[#allocation8 + $0xe0] sm:$0xff] %v1439_v56  ;;  %v1343_v54 = vadd.f32 %v3193_v18, %v3149_v8  ;;  %v1344_v40 = vadd.f32 %v3196_v27, %v3152_v9  ;;  %v1345_v53 = vadd.f32 %v3199_v59, %v3156_v46  ;;  %v1451_v10 = vmax.f32 %v1339_v63, 0.0  ;;  %v3729_v8 = vld [vmem:[#allocation61_spill] sm:$0xff]  ;;  %v3730_v46 = vld [vmem:[#allocation62_spill] sm:$0xff] }
 0x122   :  { %1552 = vst [vmem:[#allocation8 + $0xe8] sm:$0xff] %v1440_v29  ;;  %1553 = vst [vmem:[#allocation8 + $0xf0] sm:$0xff] %v1441_v37  ;;  %v1346_v16 = vadd.f32 %v3202_v44, %v3160_v22  ;;  %v1452_v31 = vmax.f32 %v1340_v50, 0.0  ;;  %v1453_v41 = vmax.f32 %v1341_v20, 0.0  ;;  %v1454_v30 = vmax.f32 %v1342_v48, 0.0  ;;  %v1737_v63 = vld [vmem:[#allocation2 + $0x1c8] sm:$0xff] }
 0x123   :  { %1554 = vst [vmem:[#allocation8 + $0xf8] sm:$0xff] %v1442_v51  ;;  %v1455_v42 = vmax.f32 %v1343_v54, 0.0  ;;  %v1456_v6 = vmax.f32 %v1344_v40, 0.0  ;;  %v1457_v43 = vmax.f32 %v1345_v53, 0.0  ;;  %1563 = vst [vmem:[#allocation8 + $0x140] sm:$0xff] %v1451_v10  ;;  %v1347_v9 = vadd.f32 %v3729_v8, %v3163_v34  ;;  %v1734_v34 = vld [vmem:[#allocation2 + $0x1b0] sm:$0xff] }
 0x124   :  { %v1458_v60 = vmax.f32 %v1346_v16, 0.0  ;;  %1564 = vst [vmem:[#allocation8 + $0x148] sm:$0xff] %v1452_v31  ;;  %1565 = vst [vmem:[#allocation8 + $0x150] sm:$0xff] %v1453_v41  ;;  %v1348_v14 = vadd.f32 %v3730_v46, %v3166_v21  ;;  %v1349_v22 = vadd.f32 %v3711_v47, %v3169_v26  ;;  %v1350_v3 = vadd.f32 %v3712_v25, %v3172_v33  ;;  %v1735_v21 = vld [vmem:[#allocation2 + $0x1b8] sm:$0xff]  ;;  %v1738_v20 = vld [vmem:[#allocation2 + $0x1d0] sm:$0xff] }
 0x125   :  { %1566 = vst [vmem:[#allocation8 + $0x158] sm:$0xff] %v1454_v30  ;;  %1567 = vst [vmem:[#allocation8 + $0x160] sm:$0xff] %v1455_v42  ;;  %v1351_v52 = vadd.f32 %v3731_v15, %v3175_v35  ;;  %v1352_v19 = vadd.f32 %v3714_v7, %v3178_v38  ;;  %v1159_v39 = vmul.f32 %v1734_v34, %v3715_v1  ;;  %v1459_v26 = vmax.f32 %v1347_v9, 0.0  ;;  %v1736_v35 = vld [vmem:[#allocation2 + $0x1c0] sm:$0xff]  ;;  %v1739_v54 = vld [vmem:[#allocation2 + $0x1d8] sm:$0xff] }
 0x126   :  { %1568 = vst [vmem:[#allocation8 + $0x168] sm:$0xff] %v1456_v6  ;;  %1569 = vst [vmem:[#allocation8 + $0x170] sm:$0xff] %v1457_v43  ;;  %v1160_v57 = vmul.f32 %v1735_v21, %v3716_v4  ;;  %v1460_v23 = vmax.f32 %v1348_v14, 0.0  ;;  %v1461_v5 = vmax.f32 %v1349_v22, 0.0  ;;  %v1462_v33 = vmax.f32 %v1350_v3, 0.0  ;;  %v3732_v38 = vld [vmem:[#allocation44_spill] sm:$0xff] }
 0x127   :  { %1570 = vst [vmem:[#allocation8 + $0x178] sm:$0xff] %v1458_v60  ;;  %v1463_v45 = vmax.f32 %v1351_v52, 0.0  ;;  %v1464_v56 = vmax.f32 %v1352_v19, 0.0  ;;  %v1353_v29 = vadd.f32 %v3717_v17, %v1159_v39  ;;  %1571 = vst [vmem:[#allocation8 + $0x180] sm:$0xff] %v1459_v26  ;;  %v1161_v51 = vmul.f32 %v1736_v35, %v3732_v38  ;;  %v1740_v10 = vld [vmem:[#allocation2 + $0x1e0] sm:$0xff]  ;;  %v1741_v41 = vld [vmem:[#allocation2 + $0x1e8] sm:$0xff] }
 0x128   :  { %v1354_v37 = vadd.f32 %v3718_v58, %v1160_v57  ;;  %1572 = vst [vmem:[#allocation8 + $0x188] sm:$0xff] %v1460_v23  ;;  %1573 = vst [vmem:[#allocation8 + $0x190] sm:$0xff] %v1461_v5  ;;  %v1162_v50 = vmul.f32 %v1737_v63, %v3029_v13  ;;  %v1163_v48 = vmul.f32 %v1738_v20, %v3039_v32  ;;  %v1742_v22 = vld [vmem:[#allocation2 + $0x1f0] sm:$0xff]  ;;  %v1743_v52 = vld [vmem:[#allocation2 + $0x1f8] sm:$0xff] }
 0x129   :  { %1574 = vst [vmem:[#allocation8 + $0x198] sm:$0xff] %v1462_v33  ;;  %v1164_v40 = vmul.f32 %v1739_v54, %v3056_v24  ;;  %1575 = vst [vmem:[#allocation8 + $0x1a0] sm:$0xff] %v1463_v45  ;;  %v1465_v53 = vmax.f32 %v1353_v29, 0.0  ;;  %v1165_v31 = vmul.f32 %v1740_v10, %v3068_v12  ;;  %v1166_v30 = vmul.f32 %v1741_v41, %v3071_v2  ;;  %v1744_v45 = vld [vmem:[#allocation2 + $0x200] sm:$0xff]  ;;  %v1745_v29 = vld [vmem:[#allocation2 + $0x208] sm:$0xff] }
 0x12a   :  { %1576 = vst [vmem:[#allocation8 + $0x1a8] sm:$0xff] %v1464_v56  ;;  %v1466_v16 = vmax.f32 %v1354_v37, 0.0  ;;  %v1355_v42 = vadd.f32 %v3181_v55, %v1161_v51  ;;  %v1356_v6 = vadd.f32 %v3184_v11, %v1162_v50  ;;  %v1357_v43 = vadd.f32 %v3187_v36, %v1163_v48  ;;  %v1746_v35 = vld [vmem:[#allocation2 + $0x210] sm:$0xff]  ;;  %v3733_v51 = vld [vmem:[#allocation16_spill] sm:$0xff]  ;;  %v1747_v50 = vld [vmem:[#allocation2 + $0x218] sm:$0xff] }
 0x12b   :  { %v1358_v60 = vadd.f32 %v3190_v62, %v1164_v40  ;;  %1577 = vst [vmem:[#allocation8 + $0x1b0] sm:$0xff] %v1465_v53  ;;  %v1359_v9 = vadd.f32 %v3193_v18, %v1165_v31  ;;  %v1360_v14 = vadd.f32 %v3196_v27, %v1166_v30  ;;  %v1167_v3 = vmul.f32 %v1742_v22, %v3076_v49  ;;  %v3734_v20 = vld [vmem:[#allocation17_spill] sm:$0xff]  ;;  %v1748_v53 = vld [vmem:[#allocation2 + $0x220] sm:$0xff]  ;;  %v3736_v41 = vld [vmem:[#allocation22_spill] sm:$0xff] }
 0x12c   :  { %1578 = vst [vmem:[#allocation8 + $0x1b8] sm:$0xff] %v1466_v16  ;;  %v1168_v19 = vmul.f32 %v1743_v52, %v3085_v28  ;;  %v1467_v34 = vmax.f32 %v1355_v42, 0.0  ;;  %v1468_v39 = vmax.f32 %v1356_v6, 0.0  ;;  %v1469_v21 = vmax.f32 %v1357_v43, 0.0  ;;  %v3735_v16 = vld [vmem:[#allocation18_spill] sm:$0xff]  ;;  %v1749_v31 = vld [vmem:[#allocation2 + $0x228] sm:$0xff] }
 0x12d   :  { %v1470_v57 = vmax.f32 %v1358_v60, 0.0  ;;  %v1471_v26 = vmax.f32 %v1359_v9, 0.0  ;;  %v1472_v23 = vmax.f32 %v1360_v14, 0.0  ;;  %v1361_v5 = vadd.f32 %v3199_v59, %v1167_v3  ;;  %v1750_v22 = vld [vmem:[#allocation2 + $0x230] sm:$0xff]  ;;  %v1751_v52 = vld [vmem:[#allocation2 + $0x238] sm:$0xff] }
 0x12e   :  { %v1362_v33 = vadd.f32 %v3202_v44, %v1168_v19  ;;  %1579 = vst [vmem:[#allocation8 + $0x1c0] sm:$0xff] %v1467_v34  ;;  %1580 = vst [vmem:[#allocation8 + $0x1c8] sm:$0xff] %v1468_v39  ;;  %v1169_v56 = vmul.f32 %v1744_v45, %v3703_v0  ;;  %v1170_v37 = vmul.f32 %v1745_v29, %v3704_v61  ;;  %v1752_v45 = vld [vmem:[#allocation2 + $0x240] sm:$0xff]  ;;  %v1753_v29 = vld [vmem:[#allocation2 + $0x248] sm:$0xff] }
 0x12f   :  { %1581 = vst [vmem:[#allocation8 + $0x1d0] sm:$0xff] %v1469_v21  ;;  %1582 = vst [vmem:[#allocation8 + $0x1d8] sm:$0xff] %v1470_v57  ;;  %v1171_v63 = vmul.f32 %v1746_v35, %v3733_v51  ;;  %v1172_v48 = vmul.f32 %v1747_v50, %v3734_v20  ;;  %v1473_v54 = vmax.f32 %v1361_v5, 0.0  ;;  %v1173_v10 = vmul.f32 %v1748_v53, %v3735_v16  ;;  %v1754_v35 = vld [vmem:[#allocation2 + $0x250] sm:$0xff]  ;;  %v1755_v50 = vld [vmem:[#allocation2 + $0x258] sm:$0xff] }
 0x130   :  { %1583 = vst [vmem:[#allocation8 + $0x1e0] sm:$0xff] %v1471_v26  ;;  %1584 = vst [vmem:[#allocation8 + $0x1e8] sm:$0xff] %v1472_v23  ;;  %v1474_v40 = vmax.f32 %v1362_v33, 0.0  ;;  %v1174_v30 = vmul.f32 %v1749_v31, %v3736_v41  ;;  %v1363_v42 = vadd.f32 %v3729_v8, %v1169_v56  ;;  %v1364_v6 = vadd.f32 %v3730_v46, %v1170_v37  ;;  %v1756_v53 = vld [vmem:[#allocation2 + $0x260] sm:$0xff]  ;;  %v1757_v31 = vld [vmem:[#allocation2 + $0x268] sm:$0xff] }
 0x131   :  { %v1365_v43 = vadd.f32 %v3711_v47, %v1171_v63  ;;  %v1366_v60 = vadd.f32 %v3712_v25, %v1172_v48  ;;  %1585 = vst [vmem:[#allocation8 + $0x1f0] sm:$0xff] %v1473_v54  ;;  %v1367_v9 = vadd.f32 %v3731_v15, %v1173_v10  ;;  %v1175_v3 = vmul.f32 %v1750_v22, %v3715_v1  ;;  %v1758_v22 = vld [vmem:[#allocation2 + $0x270] sm:$0xff] }
 0x132   :  { %1586 = vst [vmem:[#allocation8 + $0x1f8] sm:$0xff] %v1474_v40  ;;  %v1368_v14 = vadd.f32 %v3714_v7, %v1174_v30  ;;  %v1176_v19 = vmul.f32 %v1751_v52, %v3716_v4  ;;  %v1475_v34 = vmax.f32 %v1363_v42, 0.0  ;;  %v1476_v39 = vmax.f32 %v1364_v6, 0.0  ;;  %v1759_v52 = vld [vmem:[#allocation2 + $0x278] sm:$0xff] }
 0x133   :  { %v1477_v21 = vmax.f32 %v1365_v43, 0.0  ;;  %v1478_v57 = vmax.f32 %v1366_v60, 0.0  ;;  %v1479_v26 = vmax.f32 %v1367_v9, 0.0  ;;  %v1369_v5 = vadd.f32 %v3717_v17, %v1175_v3 }
 0x134   :  { %v1480_v23 = vmax.f32 %v1368_v14, 0.0  ;;  %v1370_v33 = vadd.f32 %v3718_v58, %v1176_v19  ;;  %1587 = vst [vmem:[#allocation8 + $0x200] sm:$0xff] %v1475_v34  ;;  %1588 = vst [vmem:[#allocation8 + $0x208] sm:$0xff] %v1476_v39  ;;  %v1177_v56 = vmul.f32 %v1752_v45, %v3732_v38  ;;  %v1178_v37 = vmul.f32 %v1753_v29, %v3029_v13  ;;  %v1760_v45 = vld [vmem:[#allocation2 + $0x280] sm:$0xff]  ;;  %v1761_v29 = vld [vmem:[#allocation2 + $0x288] sm:$0xff] }
 0x135   :  { %1589 = vst [vmem:[#allocation8 + $0x210] sm:$0xff] %v1477_v21  ;;  %1590 = vst [vmem:[#allocation8 + $0x218] sm:$0xff] %v1478_v57  ;;  %v1179_v63 = vmul.f32 %v1754_v35, %v3039_v32  ;;  %v1180_v48 = vmul.f32 %v1755_v50, %v3056_v24  ;;  %v1481_v54 = vmax.f32 %v1369_v5, 0.0  ;;  %v1181_v10 = vmul.f32 %v1756_v53, %v3068_v12  ;;  %v1762_v35 = vld [vmem:[#allocation2 + $0x290] sm:$0xff]  ;;  %v1763_v50 = vld [vmem:[#allocation2 + $0x298] sm:$0xff] }
 0x136   :  { %1591 = vst [vmem:[#allocation8 + $0x220] sm:$0xff] %v1479_v26  ;;  %1592 = vst [vmem:[#allocation8 + $0x228] sm:$0xff] %v1480_v23  ;;  %v1482_v40 = vmax.f32 %v1370_v33, 0.0  ;;  %v1182_v30 = vmul.f32 %v1757_v31, %v3071_v2  ;;  %v1371_v42 = vadd.f32 %v3181_v55, %v1177_v56  ;;  %v1372_v6 = vadd.f32 %v3184_v11, %v1178_v37  ;;  %v1764_v53 = vld [vmem:[#allocation2 + $0x2a0] sm:$0xff]  ;;  %v1765_v31 = vld [vmem:[#allocation2 + $0x2a8] sm:$0xff] }
 0x137   :  { %v1373_v43 = vadd.f32 %v3187_v36, %v1179_v63  ;;  %v1374_v60 = vadd.f32 %v3190_v62, %v1180_v48  ;;  %1593 = vst [vmem:[#allocation8 + $0x230] sm:$0xff] %v1481_v54  ;;  %v1375_v9 = vadd.f32 %v3193_v18, %v1181_v10  ;;  %v1183_v3 = vmul.f32 %v1758_v22, %v3076_v49  ;;  %v1766_v22 = vld [vmem:[#allocation2 + $0x2b0] sm:$0xff] }
 0x138   :  { %1594 = vst [vmem:[#allocation8 + $0x238] sm:$0xff] %v1482_v40  ;;  %v1376_v14 = vadd.f32 %v3196_v27, %v1182_v30  ;;  %v1184_v19 = vmul.f32 %v1759_v52, %v3085_v28  ;;  %v1483_v34 = vmax.f32 %v1371_v42, 0.0  ;;  %v1484_v39 = vmax.f32 %v1372_v6, 0.0  ;;  %v1767_v52 = vld [vmem:[#allocation2 + $0x2b8] sm:$0xff] }
 0x139   :  { %v1485_v21 = vmax.f32 %v1373_v43, 0.0  ;;  %v1486_v57 = vmax.f32 %v1374_v60, 0.0  ;;  %v1487_v26 = vmax.f32 %v1375_v9, 0.0  ;;  %v1377_v5 = vadd.f32 %v3199_v59, %v1183_v3 }
 0x13a   :  { %v1488_v23 = vmax.f32 %v1376_v14, 0.0  ;;  %v1378_v33 = vadd.f32 %v3202_v44, %v1184_v19  ;;  %1595 = vst [vmem:[#allocation8 + $0x240] sm:$0xff] %v1483_v34  ;;  %1596 = vst [vmem:[#allocation8 + $0x248] sm:$0xff] %v1484_v39  ;;  %v1185_v56 = vmul.f32 %v1760_v45, %v3703_v0  ;;  %v1186_v37 = vmul.f32 %v1761_v29, %v3704_v61  ;;  %v1768_v45 = vld [vmem:[#allocation2 + $0x2c0] sm:$0xff]  ;;  %v1769_v29 = vld [vmem:[#allocation2 + $0x2c8] sm:$0xff] }
 0x13b   :  { %1597 = vst [vmem:[#allocation8 + $0x250] sm:$0xff] %v1485_v21  ;;  %1598 = vst [vmem:[#allocation8 + $0x258] sm:$0xff] %v1486_v57  ;;  %v1187_v63 = vmul.f32 %v1762_v35, %v3733_v51  ;;  %v1188_v48 = vmul.f32 %v1763_v50, %v3734_v20  ;;  %v1489_v54 = vmax.f32 %v1377_v5, 0.0  ;;  %v1189_v10 = vmul.f32 %v1764_v53, %v3735_v16  ;;  %v1770_v35 = vld [vmem:[#allocation2 + $0x2d0] sm:$0xff]  ;;  %v1771_v50 = vld [vmem:[#allocation2 + $0x2d8] sm:$0xff] }
 0x13c   :  { %1599 = vst [vmem:[#allocation8 + $0x260] sm:$0xff] %v1487_v26  ;;  %1600 = vst [vmem:[#allocation8 + $0x268] sm:$0xff] %v1488_v23  ;;  %v1490_v40 = vmax.f32 %v1378_v33, 0.0  ;;  %v1190_v30 = vmul.f32 %v1765_v31, %v3736_v41  ;;  %v1379_v42 = vadd.f32 %v3729_v8, %v1185_v56  ;;  %v1380_v6 = vadd.f32 %v3730_v46, %v1186_v37  ;;  %v1772_v53 = vld [vmem:[#allocation2 + $0x2e0] sm:$0xff]  ;;  %v1773_v31 = vld [vmem:[#allocation2 + $0x2e8] sm:$0xff] }
 0x13d   :  { %v1381_v43 = vadd.f32 %v3711_v47, %v1187_v63  ;;  %v1382_v60 = vadd.f32 %v3712_v25, %v1188_v48  ;;  %1601 = vst [vmem:[#allocation8 + $0x270] sm:$0xff] %v1489_v54  ;;  %v1383_v9 = vadd.f32 %v3731_v15, %v1189_v10  ;;  %v1191_v3 = vmul.f32 %v1766_v22, %v3715_v1  ;;  %v1774_v22 = vld [vmem:[#allocation2 + $0x2f0] sm:$0xff] }
 0x13e   :  { %1602 = vst [vmem:[#allocation8 + $0x278] sm:$0xff] %v1490_v40  ;;  %v1384_v14 = vadd.f32 %v3714_v7, %v1190_v30  ;;  %v1192_v19 = vmul.f32 %v1767_v52, %v3716_v4  ;;  %v1491_v34 = vmax.f32 %v1379_v42, 0.0  ;;  %v1492_v39 = vmax.f32 %v1380_v6, 0.0  ;;  %v1775_v52 = vld [vmem:[#allocation2 + $0x2f8] sm:$0xff] }
 0x13f   :  { %v1493_v21 = vmax.f32 %v1381_v43, 0.0  ;;  %v1494_v57 = vmax.f32 %v1382_v60, 0.0  ;;  %v1495_v26 = vmax.f32 %v1383_v9, 0.0  ;;  %v1385_v5 = vadd.f32 %v3717_v17, %v1191_v3 }
 0x140   :  { %v1496_v23 = vmax.f32 %v1384_v14, 0.0  ;;  %v1386_v33 = vadd.f32 %v3718_v58, %v1192_v19  ;;  %1603 = vst [vmem:[#allocation8 + $0x280] sm:$0xff] %v1491_v34  ;;  %1604 = vst [vmem:[#allocation8 + $0x288] sm:$0xff] %v1492_v39  ;;  %v1193_v56 = vmul.f32 %v1768_v45, %v3732_v38  ;;  %v1194_v37 = vmul.f32 %v1769_v29, %v3029_v13  ;;  %v1776_v45 = vld [vmem:[#allocation2 + $0x300] sm:$0x1] }
 0x141   :  { %1605 = vst [vmem:[#allocation8 + $0x290] sm:$0xff] %v1493_v21  ;;  %1606 = vst [vmem:[#allocation8 + $0x298] sm:$0xff] %v1494_v57  ;;  %v1195_v63 = vmul.f32 %v1770_v35, %v3039_v32  ;;  %v1196_v48 = vmul.f32 %v1771_v50, %v3056_v24  ;;  %v1497_v54 = vmax.f32 %v1385_v5, 0.0  ;;  %v1197_v10 = vmul.f32 %v1772_v53, %v3068_v12  ;;  %v1777_v29 = vld [vmem:[#allocation2 + $0x308] sm:$0x1] }
 0x142   :  { %1607 = vst [vmem:[#allocation8 + $0x2a0] sm:$0xff] %v1495_v26  ;;  %1608 = vst [vmem:[#allocation8 + $0x2a8] sm:$0xff] %v1496_v23  ;;  %v1498_v40 = vmax.f32 %v1386_v33, 0.0  ;;  %v1198_v30 = vmul.f32 %v1773_v31, %v3071_v2  ;;  %v1387_v42 = vadd.f32 %v3181_v55, %v1193_v56  ;;  %v1388_v6 = vadd.f32 %v3184_v11, %v1194_v37  ;;  %v1778_v35 = vld [vmem:[#allocation2 + $0x310] sm:$0x1] }
 0x143   :  { %v1389_v43 = vadd.f32 %v3187_v36, %v1195_v63  ;;  %v1390_v60 = vadd.f32 %v3190_v62, %v1196_v48  ;;  %1609 = vst [vmem:[#allocation8 + $0x2b0] sm:$0xff] %v1497_v54  ;;  %v1391_v9 = vadd.f32 %v3193_v18, %v1197_v10  ;;  %v1199_v3 = vmul.f32 %v1774_v22, %v3076_v49  ;;  %v1779_v50 = vld [vmem:[#allocation2 + $0x318] sm:$0x1]  ;;  %v1780_v53 = vld [vmem:[#allocation2 + $0x320] sm:$0x1] }
 0x144   :  { %1610 = vst [vmem:[#allocation8 + $0x2b8] sm:$0xff] %v1498_v40  ;;  %v1392_v14 = vadd.f32 %v3196_v27, %v1198_v30  ;;  %v1200_v19 = vmul.f32 %v1775_v52, %v3085_v28  ;;  %v1499_v34 = vmax.f32 %v1387_v42, 0.0  ;;  %v1500_v39 = vmax.f32 %v1388_v6, 0.0  ;;  %v1781_v31 = vld [vmem:[#allocation2 + $0x328] sm:$0x1] }
 0x145   :  { %v1501_v21 = vmax.f32 %v1389_v43, 0.0  ;;  %v1502_v57 = vmax.f32 %v1390_v60, 0.0  ;;  %v1503_v26 = vmax.f32 %v1391_v9, 0.0  ;;  %v1393_v5 = vadd.f32 %v3199_v59, %v1199_v3  ;;  %v1782_v43 = vld [vmem:[#allocation2 + $0x330] sm:$0x1] }
 0x146   :  { %v1504_v23 = vmax.f32 %v1392_v14, 0.0  ;;  %v1394_v33 = vadd.f32 %v3202_v44, %v1200_v19  ;;  %1611 = vst [vmem:[#allocation8 + $0x2c0] sm:$0xff] %v1499_v34  ;;  %1612 = vst [vmem:[#allocation8 + $0x2c8] sm:$0xff] %v1500_v39  ;;  %v1201_v56 = vmul.f32 %v1776_v45, %v3703_v0  ;;  %v1202_v37 = vmul.f32 %v1777_v29, %v3704_v61  ;;  %v1783_v60 = vld [vmem:[#allocation2 + $0x338] sm:$0x1] }
 0x147   :  { %1613 = vst [vmem:[#allocation8 + $0x2d0] sm:$0xff] %v1501_v21  ;;  %1614 = vst [vmem:[#allocation8 + $0x2d8] sm:$0xff] %v1502_v57  ;;  %v1203_v63 = vmul.f32 %v1778_v35, %v3733_v51  ;;  %v1204_v48 = vmul.f32 %v1779_v50, %v3734_v20  ;;  %v1505_v54 = vmax.f32 %v1393_v5, 0.0  ;;  %v1205_v10 = vmul.f32 %v1780_v53, %v3735_v16  ;;  %v1786_v52 = vld [vmem:[#allocation2 + $0x350] sm:$0x1] }
 0x148   :  { %1615 = vst [vmem:[#allocation8 + $0x2e0] sm:$0xff] %v1503_v26  ;;  %1616 = vst [vmem:[#allocation8 + $0x2e8] sm:$0xff] %v1504_v23  ;;  %v1506_v40 = vmax.f32 %v1394_v33, 0.0  ;;  %v1206_v30 = vmul.f32 %v1781_v31, %v3736_v41  ;;  %v1395_v0 = vadd.f32 %v3729_v8, %v1201_v56  ;;  %v1396_v61 = vadd.f32 %v3730_v46, %v1202_v37  ;;  %v1787_v34 = vld [vmem:[#allocation2 + $0x358] sm:$0x1] }
 0x149   :  { %v1397_v42 = vadd.f32 %v3711_v47, %v1203_v63  ;;  %v1398_v51 = vadd.f32 %v3712_v25, %v1204_v48  ;;  %1617 = vst [vmem:[#allocation8 + $0x2f0] sm:$0xff] %v1505_v54  ;;  %v1399_v20 = vadd.f32 %v3731_v15, %v1205_v10  ;;  %v1207_v16 = vmul.f32 %v1782_v43, %v3715_v1  ;;  %v1785_v15 = vld [vmem:[#allocation2 + $0x348] sm:$0x1]  ;;  %v1788_v21 = vld [vmem:[#allocation2 + $0x360] sm:$0x1] }
 0x14a   :  { %1618 = vst [vmem:[#allocation8 + $0x2f8] sm:$0xff] %v1506_v40  ;;  %v1400_v6 = vadd.f32 %v3714_v7, %v1206_v30  ;;  %v1208_v41 = vmul.f32 %v1783_v60, %v3716_v4  ;;  %v1507_v9 = vmax.f32 %v1395_v0, 0.0  ;;  %v1508_v8 = vmax.f32 %v1396_v61, 0.0  ;;  %v1784_v7 = vld [vmem:[#allocation2 + $0x340] sm:$0x1] }
 0x14b   :  { %v1509_v14 = vmax.f32 %v1397_v42, 0.0  ;;  %v1510_v46 = vmax.f32 %v1398_v51, 0.0  ;;  %v1511_v22 = vmax.f32 %v1399_v20, 0.0  ;;  %v1401_v25 = vadd.f32 %v3717_v17, %v1207_v16  ;;  %v1789_v26 = vld [vmem:[#allocation2 + $0x368] sm:$0x1] }
 0x14c   :  { %v1512_v47 = vmax.f32 %v1400_v6, 0.0  ;;  %v1402_v3 = vadd.f32 %v3718_v58, %v1208_v41  ;;  %1619 = vst [vmem:[#allocation8 + $0x300] sm:$0x1] %v1507_v9  ;;  %1620 = vst [vmem:[#allocation8 + $0x308] sm:$0x1] %v1508_v8  ;;  %v1209_v1 = vmul.f32 %v1784_v7, %v3732_v38  ;;  %v1210_v4 = vmul.f32 %v1785_v15, %v3029_v13 }
 0x14d   :  { %1621 = vst [vmem:[#allocation8 + $0x310] sm:$0x1] %v1509_v14  ;;  %1622 = vst [vmem:[#allocation8 + $0x318] sm:$0x1] %v1510_v46  ;;  %v1211_v19 = vmul.f32 %v1786_v52, %v3039_v32  ;;  %v1212_v39 = vmul.f32 %v1787_v34, %v3056_v24  ;;  %v1513_v17 = vmax.f32 %v1401_v25, 0.0  ;;  %v1213_v57 = vmul.f32 %v1788_v21, %v3068_v12 }
 0x14e   :  { %1623 = vst [vmem:[#allocation8 + $0x320] sm:$0x1] %v1511_v22  ;;  %1624 = vst [vmem:[#allocation8 + $0x328] sm:$0x1] %v1512_v47  ;;  %v1514_v58 = vmax.f32 %v1402_v3, 0.0  ;;  %v1214_v23 = vmul.f32 %v1789_v26, %v3071_v2  ;;  %v1403_v38 = vadd.f32 %v3181_v55, %v1209_v1  ;;  %v1404_v13 = vadd.f32 %v3184_v11, %v1210_v4 }
 0x14f   :  { %v1405_v5 = vadd.f32 %v3187_v36, %v1211_v19  ;;  %v1406_v32 = vadd.f32 %v3190_v62, %v1212_v39  ;;  %1625 = vst [vmem:[#allocation8 + $0x330] sm:$0x1] %v1513_v17  ;;  %v1407_v24 = vadd.f32 %v3193_v18, %v1213_v57  ;;  %v1790_v45 = vld [vmem:[#allocation2 + $0x370] sm:$0x1]  ;;  %v1791_v56 = vld [vmem:[#allocation2 + $0x378] sm:$0x1] }
 0x150   :  { %1626 = vst [vmem:[#allocation8 + $0x338] sm:$0x1] %v1514_v58  ;;  %v1408_v33 = vadd.f32 %v3196_v27, %v1214_v23  ;;  %v1215_v12 = vmul.f32 %v1790_v45, %v3076_v49  ;;  %v1216_v2 = vmul.f32 %v1791_v56, %v3085_v28  ;;  %v1515_v29 = vmax.f32 %v1403_v38, 0.0 }
 0x151   :  { %v1516_v55 = vmax.f32 %v1404_v13, 0.0  ;;  %v1517_v37 = vmax.f32 %v1405_v5, 0.0  ;;  %v1518_v11 = vmax.f32 %v1406_v32, 0.0  ;;  %v1519_v36 = vmax.f32 %v1407_v24, 0.0 }
 0x152   :  { %v1520_v62 = vmax.f32 %v1408_v33, 0.0  ;;  %v1409_v35 = vadd.f32 %v3199_v59, %v1215_v12  ;;  %v1410_v18 = vadd.f32 %v3202_v44, %v1216_v2  ;;  %1627 = vst [vmem:[#allocation8 + $0x340] sm:$0x1] %v1515_v29 }
 0x153   :  { %1628 = vst [vmem:[#allocation8 + $0x348] sm:$0x1] %v1516_v55  ;;  %1629 = vst [vmem:[#allocation8 + $0x350] sm:$0x1] %v1517_v37 }
 0x154   :  { %1630 = vst [vmem:[#allocation8 + $0x358] sm:$0x1] %v1518_v11  ;;  %1631 = vst [vmem:[#allocation8 + $0x360] sm:$0x1] %v1519_v36  ;;  %v1521_v49 = vmax.f32 %v1409_v35, 0.0  ;;  %v1522_v28 = vmax.f32 %v1410_v18, 0.0 }
 0x155   :  { %1632 = vst [vmem:[#allocation8 + $0x368] sm:$0x1] %v1520_v62 }
 0x156   :  { %1633 = vst [vmem:[#allocation8 + $0x370] sm:$0x1] %v1521_v49  ;;  %1634 = vst [vmem:[#allocation8 + $0x378] sm:$0x1] %v1522_v28 }
 0x157   :  { %1869 = shalt.err (!%p1866_p0)
}
 0x158   :  { %s1870_s25 = scalar_lea.hbm %s3398_s3, 14336 }
 0x159   :  { %p1871_p1 = scmp.ne.s32.totalorder %s3398_s3, %s1870_s25  ;;  %p1874_p2 = scmp.lt.u32.totalorder %s1870_s25, %s3398_s3 }
 0x15b   :  { %p1876_p3 = pnand %p1874_p2, %p1871_p1 }
 0x15d   :  { %1879 = shalt.err (!%p1876_p3)
}
 0x15e   :  { %1646 = dma.vmem_to_hbm [thread:$0]  %s1641_s21, 14336, %s3398_s3, [#allocation4], %s1888_s1, %s1888_s1, %s1889_s7  }
 0x15f   :  { %1884 = dma.done.wait [#allocation4], 14336  }
 0x160   :  { %1885 = vsyncadd [#allocation4], 4294952960 }
 0x161   :  { %1650 = vsyncpa [#allocation3], 1 }
 0x162   :  { %1651 = vsyncpa [#allocation6], 1 }
 0x163   :  { %1652 = vsyncpa [#allocation4], 1 }

</bundles_post_ra>
